<compile_context>
chip_gen: v7x
topology: tpu7x:2x2x1
jax: 0.10.0
libtpu: 0.0.40
codegen_flags: <defaults>
</compile_context>

<pallas_src>
import functools

import jax
import jax.numpy as jnp
from jax import lax
from jax.experimental import pallas as pl
from jax.experimental.pallas import tpu as pltpu


_VMEM_LIMIT = 48 * 1024 * 1024   # < v7x's 64 MiB physical VMEM, well under v5e/v6e's 128 MiB


def _pick_tile(total: int, desired: int, align: int) -> int:
    """Largest multiple of `align` <= `desired` that divides `total`; else the full extent."""
    if total <= desired:
        return total
    t = (desired // align) * align
    while t >= align:
        if total % t == 0:
            return t
        t -= align
    return total


def _head_chunk(num_heads: int, head_dim: int) -> int:
    """Smallest head-chunk whose qkv column tile (hc*3*Dh) is lane-legal (multiple of 128);
    falls back to all heads (column tile == full 3*dim, always legal)."""
    for c in range(1, num_heads + 1):
        if num_heads % c == 0 and (c * 3 * head_dim) % 128 == 0:
            return c
    return num_heads


def _complex_mm(xr, xi, wr, wi):
    """Karatsuba complex matmul: 3 bf16 MXU matmuls, f32 accumulation.
    xr/xi: [M,K] f32, wr/wi: [K,N] f32 -> (real, imag) f32 [M,N]."""
    dn = (((1,), (0,)), ((), ()))
    xr16 = xr.astype(jnp.bfloat16)
    xi16 = xi.astype(jnp.bfloat16)
    wr16 = wr.astype(jnp.bfloat16)
    wi16 = wi.astype(jnp.bfloat16)
    xs16 = (xr + xi).astype(jnp.bfloat16)
    ws16 = (wr + wi).astype(jnp.bfloat16)
    t_rr = lax.dot_general(xr16, wr16, dn, preferred_element_type=jnp.float32)
    t_ii = lax.dot_general(xi16, wi16, dn, preferred_element_type=jnp.float32)
    t_ss = lax.dot_general(xs16, ws16, dn, preferred_element_type=jnp.float32)
    return t_rr - t_ii, t_ss - t_rr - t_ii


# ----------------------------------------------------------------------------
# Kernel 1: qkv projection  -> head-major qkv[B, H, 3, N, Dh]
# ----------------------------------------------------------------------------
def qkv_proj_kernel(xr_ref, xi_ref, wr_ref, wi_ref, br_ref, bi_ref,
                    qkv_r_ref, qkv_i_ref, accr, acci, *, hc, dh):
    k = pl.program_id(3)

    @pl.when(k == 0)
    def _():
        accr[...] = jnp.zeros_like(accr)
        acci[...] = jnp.zeros_like(acci)

    re, im = _complex_mm(xr_ref[0], xi_ref[0], wr_ref[...], wi_ref[...])
    accr[...] += re
    acci[...] += im

    @pl.when(k == pl.num_programs(3) - 1)
    def _():
        out_r = accr[...] + br_ref[...]
        out_i = acci[...] + bi_ref[...]
        # scatter the (tm, hc*3*dh) tile into the head-major (hc, 3, tm, dh) output block
        for hh in range(hc):
            base = hh * 3 * dh
            for s in range(3):          # 0 = q, 1 = k, 2 = v
                lo = base + s * dh
                qkv_r_ref[0, hh, s] = out_r[:, lo:lo + dh]
                qkv_i_ref[0, hh, s] = out_i[:, lo:lo + dh]


def qkv_projection(xr, xi, wr_t, wi_t, br, bi, *, num_heads, head_dim):
    # xr/xi: [B, N, D]; wr_t/wi_t: [D, 3D] with columns ordered (h, qkv, d); br/bi: [1, 3D]
    B, N, D = xr.shape
    H, Dh = num_heads, head_dim
    hc = _head_chunk(H, Dh)
    tm = _pick_tile(N, 256, 8)
    tk = _pick_tile(D, 512, 128)
    tn = hc * 3 * Dh
    grid = (B, N // tm, H // hc, D // tk)

    x_spec = pl.BlockSpec((1, tm, tk), lambda b, i, j, k: (b, i, k))
    w_spec = pl.BlockSpec((tk, tn), lambda b, i, j, k: (k, j))
    b_spec = pl.BlockSpec((1, tn), lambda b, i, j, k: (0, j))
    o_spec = pl.BlockSpec((1, hc, 3, tm, Dh), lambda b, i, j, k: (b, j, 0, i, 0))

    out_shape = (jax.ShapeDtypeStruct((B, H, 3, N, Dh), jnp.float32),
                 jax.ShapeDtypeStruct((B, H, 3, N, Dh), jnp.float32))
    kern = functools.partial(qkv_proj_kernel, hc=hc, dh=Dh)
    return pl.pallas_call(
        kern,
        out_shape=out_shape,
        grid_spec=pltpu.PrefetchScalarGridSpec(
            num_scalar_prefetch=0,
            grid=grid,
            in_specs=[x_spec, x_spec, w_spec, w_spec, b_spec, b_spec],
            out_specs=[o_spec, o_spec],
            scratch_shapes=[pltpu.VMEM((tm, tn), jnp.float32),
                            pltpu.VMEM((tm, tn), jnp.float32)]),
        compiler_params=pltpu.CompilerParams(
            dimension_semantics=("parallel", "parallel", "parallel", "arbitrary"),
            vmem_limit_bytes=_VMEM_LIMIT),
    )(xr, xi, wr_t, wi_t, br, bi)


# ----------------------------------------------------------------------------
# Kernel 2: flash-style complex attention (online softmax over |dots| * scale)
# ----------------------------------------------------------------------------
def flash_complex_attn_kernel(qr_ref, qi_ref, kr_ref, ki_ref, vr_ref, vi_ref,
                              fqr_ref, fqi_ref, fkr_ref, fki_ref,
                              or_ref, oi_ref,
                              m_sc, l_sc, accr_sc, acci_sc, *, scale):
    kv = pl.program_id(2)

    @pl.when(kv == 0)
    def _():
        m_sc[...] = jnp.full_like(m_sc, -jnp.inf)
        l_sc[...] = jnp.zeros_like(l_sc)
        accr_sc[...] = jnp.zeros_like(accr_sc)
        acci_sc[...] = jnp.zeros_like(acci_sc)

    qr = qr_ref[0, 0]
    qi = qi_ref[0, 0]
    kr = kr_ref[0, 0]
    kii = ki_ref[0, 0]
    fqr, fqi = fqr_ref[...], fqi_ref[...]
    fkr, fki = fkr_ref[...], fki_ref[...]

    # rotary embedding; fold the softmax scale into q_rot (|s*z| = s*|z| for s > 0)
    a = (qr * fqr - qi * fqi) * scale          # Re(q_rot) * scale
    b = (qr * fqi + qi * fqr) * scale          # Im(q_rot) * scale
    c = kr * fkr - kii * fki                   # Re(k_rot)
    d = kr * fki + kii * fkr                   # Im(k_rot)

    # dots = q_rot @ conj(k_rot)^T via 3 bf16 MXU matmuls (Karatsuba):
    #   Re = a c^T + b d^T ;  Im = (b - a)(c + d)^T + a c^T - b d^T
    dn = (((1,), (1,)), ((), ()))
    t1 = lax.dot_general(a.astype(jnp.bfloat16), c.astype(jnp.bfloat16), dn,
                         preferred_element_type=jnp.float32)
    t2 = lax.dot_general(b.astype(jnp.bfloat16), d.astype(jnp.bfloat16), dn,
                         preferred_element_type=jnp.float32)
    t3 = lax.dot_general((b - a).astype(jnp.bfloat16), (c + d).astype(jnp.bfloat16), dn,
                         preferred_element_type=jnp.float32)
    s_re = t1 + t2
    s_im = t3 + t1 - t2
    logits = jnp.sqrt(s_re * s_re + s_im * s_im)          # (tq, tk), scale already folded in

    # online softmax
    m_prev = m_sc[...]
    m_new = jnp.maximum(m_prev, jnp.max(logits, axis=-1, keepdims=True))
    alpha = jnp.exp(m_prev - m_new)
    p = jnp.exp(logits - m_new)
    l_sc[...] = alpha * l_sc[...] + jnp.sum(p, axis=-1, keepdims=True)

    dn_pv = (((1,), (0,)), ((), ()))
    p16 = p.astype(jnp.bfloat16)
    accr_sc[...] = alpha * accr_sc[...] + lax.dot_general(
        p16, vr_ref[0, 0].astype(jnp.bfloat16), dn_pv, preferred_element_type=jnp.float32)
    acci_sc[...] = alpha * acci_sc[...] + lax.dot_general(
        p16, vi_ref[0, 0].astype(jnp.bfloat16), dn_pv, preferred_element_type=jnp.float32)
    m_sc[...] = m_new

    @pl.when(kv == pl.num_programs(2) - 1)
    def _():
        inv_l = pl.reciprocal(l_sc[...], approx=True)
        or_ref[0] = accr_sc[...] * inv_l
        oi_ref[0] = acci_sc[...] * inv_l


def complex_attention_core(qkv_r, qkv_i, fr, fi, scale):
    # qkv_r/qkv_i: [B*H, 3, N, Dh];  fr/fi: [N, Dh]
    BH, _, N, Dh = qkv_r.shape
    tq = _pick_tile(N, 256, 8)
    tk = _pick_tile(N, 256, 8)
    grid = (BH, N // tq, N // tk)

    # TODO(synk): for head_dim < 128 a multi-head (lane-dense) output block would further
    # reduce masked partial stores; left single-head per grid step for simplicity.
    q_spec = pl.BlockSpec((1, 1, tq, Dh), lambda bh, qi, ki: (bh, 0, qi, 0))
    k_spec = pl.BlockSpec((1, 1, tk, Dh), lambda bh, qi, ki: (bh, 1, ki, 0))
    v_spec = pl.BlockSpec((1, 1, tk, Dh), lambda bh, qi, ki: (bh, 2, ki, 0))
    fq_spec = pl.BlockSpec((tq, Dh), lambda bh, qi, ki: (qi, 0))
    fk_spec = pl.BlockSpec((tk, Dh), lambda bh, qi, ki: (ki, 0))
    o_spec = pl.BlockSpec((1, tq, Dh), lambda bh, qi, ki: (bh, qi, 0))

    out_shape = (jax.ShapeDtypeStruct((BH, N, Dh), jnp.float32),
                 jax.ShapeDtypeStruct((BH, N, Dh), jnp.float32))
    kern = functools.partial(flash_complex_attn_kernel, scale=scale)
    return pl.pallas_call(
        kern,
        out_shape=out_shape,
        grid_spec=pltpu.PrefetchScalarGridSpec(
            num_scalar_prefetch=0,
            grid=grid,
            in_specs=[q_spec, q_spec, k_spec, k_spec, v_spec, v_spec,
                      fq_spec, fq_spec, fk_spec, fk_spec],
            out_specs=[o_spec, o_spec],
            scratch_shapes=[pltpu.VMEM((tq, 1), jnp.float32),
                            pltpu.VMEM((tq, 1), jnp.float32),
                            pltpu.VMEM((tq, Dh), jnp.float32),
                            pltpu.VMEM((tq, Dh), jnp.float32)]),
        compiler_params=pltpu.CompilerParams(
            dimension_semantics=("parallel", "parallel", "arbitrary"),
            vmem_limit_bytes=_VMEM_LIMIT),
    )(qkv_r, qkv_i, qkv_r, qkv_i, qkv_r, qkv_i, fr, fi, fr, fi)


# ----------------------------------------------------------------------------
# Kernel 3: output projection; head axis is the contraction axis
# ----------------------------------------------------------------------------
def out_proj_kernel(or_ref, oi_ref, wr_ref, wi_ref, br_ref, bi_ref,
                    yr_ref, yi_ref, accr, acci):
    kh = pl.program_id(3)

    @pl.when(kh == 0)
    def _():
        accr[...] = jnp.zeros_like(accr)
        acci[...] = jnp.zeros_like(acci)

    re, im = _complex_mm(or_ref[0, 0], oi_ref[0, 0], wr_ref[...], wi_ref[...])
    accr[...] += re
    acci[...] += im

    @pl.when(kh == pl.num_programs(3) - 1)
    def _():
        yr_ref[0] = accr[...] + br_ref[...]
        yi_ref[0] = acci[...] + bi_ref[...]


def out_projection(o_r, o_i, wr_t, wi_t, br, bi):
    # o_r/o_i: [B, H, N, Dh]; wr_t/wi_t: [D, D] with rows ordered (h, d); br/bi: [1, D]
    B, H, N, Dh = o_r.shape
    D = H * Dh
    tm = _pick_tile(N, 256, 8)
    tn = _pick_tile(D, 512, 128)
    grid = (B, N // tm, D // tn, H)

    o_spec = pl.BlockSpec((1, 1, tm, Dh), lambda b, i, j, kh: (b, kh, i, 0))
    w_spec = pl.BlockSpec((Dh, tn), lambda b, i, j, kh: (kh, j))
    b_spec = pl.BlockSpec((1, tn), lambda b, i, j, kh: (0, j))
    y_spec = pl.BlockSpec((1, tm, tn), lambda b, i, j, kh: (b, i, j))

    out_shape = (jax.ShapeDtypeStruct((B, N, D), jnp.float32),
                 jax.ShapeDtypeStruct((B, N, D), jnp.float32))
    return pl.pallas_call(
        out_proj_kernel,
        out_shape=out_shape,
        grid_spec=pltpu.PrefetchScalarGridSpec(
            num_scalar_prefetch=0,
            grid=grid,
            in_specs=[o_spec, o_spec, w_spec, w_spec, b_spec, b_spec],
            out_specs=[y_spec, y_spec],
            scratch_shapes=[pltpu.VMEM((tm, tn), jnp.float32),
                            pltpu.VMEM((tm, tn), jnp.float32)]),
        compiler_params=pltpu.CompilerParams(
            dimension_semantics=("parallel", "parallel", "parallel", "arbitrary"),
            vmem_limit_bytes=_VMEM_LIMIT),
    )(o_r, o_i, wr_t, wi_t, br, bi)


# ----------------------------------------------------------------------------
# Module wrapper: parameters in canonical (PyTorch) layout + kernel layouts at init
# ----------------------------------------------------------------------------
class ComplexAttentionPallas:
    def __init__(self, dim, num_heads, key):
        assert dim % num_heads == 0
        self.dim = dim
        self.num_heads = num_heads
        self.head_dim = dim // num_heads
        self.scale = self.head_dim ** (-0.5)
        k1, k2, k3, k4 = jax.random.split(key, 4)
        s = 1.0 / jnp.sqrt(jnp.float32(dim))

        # canonical parameters (same layout/semantics as the PyTorch module)
        self.wqkv_re = jax.random.normal(k1, (dim * 3, dim), jnp.float32) * s
        self.wqkv_im = jax.random.normal(k2, (dim * 3, dim), jnp.float32) * s
        self.bqkv_re = jnp.zeros((dim * 3,), jnp.float32)
        self.bqkv_im = jnp.zeros((dim * 3,), jnp.float32)
        self.wout_re = jax.random.normal(k3, (dim, dim), jnp.float32) * s
        self.wout_im = jax.random.normal(k4, (dim, dim), jnp.float32) * s
        self.bout_re = jnp.zeros((dim,), jnp.float32)
        self.bout_im = jnp.zeros((dim,), jnp.float32)

        # kernel layouts (built once at init, free at run time):
        #  - transpose to [in, out] so the MXU sees a plain [M,K]x[K,N] matmul
        #  - permute qkv output columns from (h, d, qkv) to (h, qkv, d) so the projection
        #    kernel can emit head-major q/k/v without any wrapper-side transpose
        h, dh = num_heads, self.head_dim
        perm = jnp.transpose(jnp.arange(3 * dim).reshape(h, dh, 3), (0, 2, 1)).reshape(-1)
        self.wqkv_re_t = jnp.transpose(self.wqkv_re[perm, :])   # [dim, 3*dim]
        self.wqkv_im_t = jnp.transpose(self.wqkv_im[perm, :])
        self.bqkv_re_p = self.bqkv_re[perm].reshape(1, 3 * dim)
        self.bqkv_im_p = self.bqkv_im[perm].reshape(1, 3 * dim)
        self.wout_re_t = jnp.transpose(self.wout_re)            # [dim, dim], rows = (h, d)
        self.wout_im_t = jnp.transpose(self.wout_im)
        self.bout_re_p = self.bout_re.reshape(1, dim)
        self.bout_im_p = self.bout_im.reshape(1, dim)

    def __call__(self, xr, xi, fr, fi):
        b, n, d = xr.shape
        h, dh = self.num_heads, self.head_dim

        qkv_r, qkv_i = qkv_projection(xr, xi, self.wqkv_re_t, self.wqkv_im_t,
                                      self.bqkv_re_p, self.bqkv_im_p,
                                      num_heads=h, head_dim=dh)            # [b, h, 3, n, dh]

        o_r, o_i = complex_attention_core(
            qkv_r.reshape(b * h, 3, n, dh), qkv_i.reshape(b * h, 3, n, dh),
            fr, fi, self.scale)                                            # [b*h, n, dh]

        y_r, y_i = out_projection(o_r.reshape(b, h, n, dh), o_i.reshape(b, h, n, dh),
                                  self.wout_re_t, self.wout_im_t,
                                  self.bout_re_p, self.bout_im_p)          # [b, n, d]
        return y_r, y_i


# ----------------------------------------------------------------------------
# Pure-JAX complex64 reference (correctness check only)
# ----------------------------------------------------------------------------
def reference(xr, xi, fr, fi, mod):
    x = (xr + 1j * xi).astype(jnp.complex64)
    freqs = (fr + 1j * fi).astype(jnp.complex64)
    wqkv = (mod.wqkv_re + 1j * mod.wqkv_im).astype(jnp.complex64)
    bqkv = (mod.bqkv_re + 1j * mod.bqkv_im).astype(jnp.complex64)
    wout = (mod.wout_re + 1j * mod.wout_im).astype(jnp.complex64)
    bout = (mod.bout_re + 1j * mod.bout_im).astype(jnp.complex64)
    b, n, d = x.shape
    h, dh = mod.num_heads, mod.head_dim
    qkv = x @ wqkv.T + bqkv
    qkv = qkv.reshape(b, n, h, dh, 3)
    q = jnp.transpose(qkv[..., 0], (0, 2, 1, 3))
    k = jnp.transpose(qkv[..., 1], (0, 2, 1, 3))
    v = jnp.transpose(qkv[..., 2], (0, 2, 1, 3))
    q = q * freqs
    k = k * freqs
    dots = jnp.einsum('bhnd,bhmd->bhnm', q, jnp.conj(k))
    attn = jax.nn.softmax(jnp.abs(dots) * mod.scale, axis=-1)
    out = jnp.einsum('bhnm,bhmd->bhnd', attn.astype(v.dtype), v)
    out = jnp.transpose(out, (0, 2, 1, 3)).reshape(b, n, d)
    return out @ wout.T + bout


if __name__ == "__main__":
    key = jax.random.PRNGKey(0)
    kx1, kx2, kf, kp = jax.random.split(key, 4)

    B, N, DIM, H = 2, 8, 32, 4
    DH = DIM // H

    xr = jax.random.normal(kx1, (B, N, DIM), jnp.float32)
    xi = jax.random.normal(kx2, (B, N, DIM), jnp.float32)
    # unit-modulus rotary frequencies (as in real rotary position embeddings)
    theta = jax.random.uniform(kf, (N, DH), jnp.float32, 0.0, 2.0 * jnp.pi)
    fr = jnp.cos(theta)
    fi = jnp.sin(theta)

    mod = ComplexAttentionPallas(DIM, H, kp)

    yr, yi = mod(xr, xi, fr, fi)
    jax.block_until_ready((yr, yi))

    ref = reference(xr, xi, fr, fi, mod)
    # bf16 MXU operands with f32 accumulation -> compare at bf16-level tolerance
    assert jnp.allclose(yr, ref.real, atol=3e-2, rtol=3e-2), "real part mismatch"
    assert jnp.allclose(yi, ref.imag, atol=3e-2, rtol=3e-2), "imag part mismatch"

    print("KERNEL_OK")
</pallas_src>

<mosaic_0001>
module attributes {stable_mosaic.version = 11 : i64} {
  func.func @qkv_proj_kernel(%arg0: i32, %arg1: i32, %arg2: i32, %arg3: i32, %arg4: memref<1x8x32xf32, #tpu.memory_space<vmem>>, %arg5: memref<1x8x32xf32, #tpu.memory_space<vmem>>, %arg6: memref<32x96xf32, #tpu.memory_space<vmem>>, %arg7: memref<32x96xf32, #tpu.memory_space<vmem>>, %arg8: memref<1x96xf32, #tpu.memory_space<vmem>>, %arg9: memref<1x96xf32, #tpu.memory_space<vmem>>, %arg10: memref<1x4x3x8x8xf32, #tpu.memory_space<vmem>>, %arg11: memref<1x4x3x8x8xf32, #tpu.memory_space<vmem>>, %arg12: memref<8x96xf32, #tpu.memory_space<vmem>>, %arg13: memref<8x96xf32, #tpu.memory_space<vmem>>) attributes {dimension_semantics = [#tpu.dimension_semantics<parallel>, #tpu.dimension_semantics<parallel>, #tpu.dimension_semantics<parallel>, #tpu.dimension_semantics<arbitrary>], iteration_bounds = array<i64: 2, 1, 1, 1>, scalar_prefetch = 0 : i64, scratch_operands = 2 : i64, tpu.core_type = #tpu.core_type<tc>, window_params = [{transform_indices = @transform_0, window_bounds = array<i64: 1, 8, 32>}, {transform_indices = @transform_1, window_bounds = array<i64: 1, 8, 32>}, {transform_indices = @transform_2, window_bounds = array<i64: 32, 96>}, {transform_indices = @transform_3, window_bounds = array<i64: 32, 96>}, {transform_indices = @transform_4, window_bounds = array<i64: 1, 96>}, {transform_indices = @transform_5, window_bounds = array<i64: 1, 96>}, {transform_indices = @transform_6, window_bounds = array<i64: 1, 4, 3, 8, 8>}, {transform_indices = @transform_7, window_bounds = array<i64: 1, 4, 3, 8, 8>}]} {
    %c0_i32 = arith.constant 0 : i32
    %0 = arith.cmpi eq, %arg3, %c0_i32 : i32
    %1 = arith.extui %0 : i1 to i32
    %c0_i32_0 = arith.constant 0 : i32
    %2 = arith.cmpi ne, %1, %c0_i32_0 : i32
    scf.if %2 {
      %cst_22 = arith.constant 0.000000e+00 : f32
      %32 = vector.broadcast %cst_22 : f32 to vector<8x96xf32>
      %c0_23 = arith.constant 0 : index
      %c0_24 = arith.constant 0 : index
      %33 = vector.load %arg12[%c0_23, %c0_24] : memref<8x96xf32, #tpu.memory_space<vmem>>, vector<8x96xf32>
      tpu.vector_store %arg12[%c0_23, %c0_24], %32 {strides = array<i32>} : memref<8x96xf32, #tpu.memory_space<vmem>>, vector<8x96xf32>,
      %cst_25 = arith.constant 0.000000e+00 : f32
      %34 = vector.broadcast %cst_25 : f32 to vector<8x96xf32>
      %c0_26 = arith.constant 0 : index
      %c0_27 = arith.constant 0 : index
      %35 = vector.load %arg13[%c0_26, %c0_27] : memref<8x96xf32, #tpu.memory_space<vmem>>, vector<8x96xf32>
      tpu.vector_store %arg13[%c0_26, %c0_27], %34 {strides = array<i32>} : memref<8x96xf32, #tpu.memory_space<vmem>>, vector<8x96xf32>,
    } else {
    }
    %c0 = arith.constant 0 : index
    %c0_1 = arith.constant 0 : index
    %c0_2 = arith.constant 0 : index
    %3 = vector.load %arg4[%c0, %c0_1, %c0_2] : memref<1x8x32xf32, #tpu.memory_space<vmem>>, vector<1x8x32xf32>
    %4 = vector.shape_cast %3 : vector<1x8x32xf32> to vector<8x32xf32>
    %c0_3 = arith.constant 0 : index
    %c0_4 = arith.constant 0 : index
    %c0_5 = arith.constant 0 : index
    %5 = vector.load %arg5[%c0_3, %c0_4, %c0_5] : memref<1x8x32xf32, #tpu.memory_space<vmem>>, vector<1x8x32xf32>
    %6 = vector.shape_cast %5 : vector<1x8x32xf32> to vector<8x32xf32>
    %c0_6 = arith.constant 0 : index
    %c0_7 = arith.constant 0 : index
    %7 = vector.load %arg6[%c0_6, %c0_7] : memref<32x96xf32, #tpu.memory_space<vmem>>, vector<32x96xf32>
    %c0_8 = arith.constant 0 : index
    %c0_9 = arith.constant 0 : index
    %8 = vector.load %arg7[%c0_8, %c0_9] : memref<32x96xf32, #tpu.memory_space<vmem>>, vector<32x96xf32>
    %9 = arith.truncf %4 : vector<8x32xf32> to vector<8x32xbf16>
    %10 = arith.truncf %6 : vector<8x32xf32> to vector<8x32xbf16>
    %11 = arith.truncf %7 : vector<32x96xf32> to vector<32x96xbf16>
    %12 = arith.truncf %8 : vector<32x96xf32> to vector<32x96xbf16>
    %13 = arith.addf %4, %6 : vector<8x32xf32>
    %14 = arith.truncf %13 : vector<8x32xf32> to vector<8x32xbf16>
    %15 = arith.addf %7, %8 : vector<32x96xf32>
    %16 = arith.truncf %15 : vector<32x96xf32> to vector<32x96xbf16>
    %cst = arith.constant dense<0.000000e+00> : vector<8x96xf32>
    %17 = tpu.matmul %9, %11, %cst {dimension_numbers = #tpu.dot_dimension_numbers<[1], [0], [0], [1], [0, 0, 1, 1], [], []>} : vector<8x32xbf16>, vector<32x96xbf16>, vector<8x96xf32> -> vector<8x96xf32>
    %cst_10 = arith.constant dense<0.000000e+00> : vector<8x96xf32>
    %18 = tpu.matmul %10, %12, %cst_10 {dimension_numbers = #tpu.dot_dimension_numbers<[1], [0], [0], [1], [0, 0, 1, 1], [], []>} : vector<8x32xbf16>, vector<32x96xbf16>, vector<8x96xf32> -> vector<8x96xf32>
    %cst_11 = arith.constant dense<0.000000e+00> : vector<8x96xf32>
    %19 = tpu.matmul %14, %16, %cst_11 {dimension_numbers = #tpu.dot_dimension_numbers<[1], [0], [0], [1], [0, 0, 1, 1], [], []>} : vector<8x32xbf16>, vector<32x96xbf16>, vector<8x96xf32> -> vector<8x96xf32>
    %20 = arith.subf %17, %18 : vector<8x96xf32>
    %21 = arith.subf %19, %17 : vector<8x96xf32>
    %22 = arith.subf %21, %18 : vector<8x96xf32>
    %c0_12 = arith.constant 0 : index
    %c0_13 = arith.constant 0 : index
    %23 = vector.load %arg12[%c0_12, %c0_13] : memref<8x96xf32, #tpu.memory_space<vmem>>, vector<8x96xf32>
    %24 = arith.addf %23, %20 : vector<8x96xf32>
    %c0_14 = arith.constant 0 : index
    %c0_15 = arith.constant 0 : index
    %25 = vector.load %arg12[%c0_14, %c0_15] : memref<8x96xf32, #tpu.memory_space<vmem>>, vector<8x96xf32>
    tpu.vector_store %arg12[%c0_14, %c0_15], %24 {strides = array<i32>} : memref<8x96xf32, #tpu.memory_space<vmem>>, vector<8x96xf32>,
    %c0_16 = arith.constant 0 : index
    %c0_17 = arith.constant 0 : index
    %26 = vector.load %arg13[%c0_16, %c0_17] : memref<8x96xf32, #tpu.memory_space<vmem>>, vector<8x96xf32>
    %27 = arith.addf %26, %22 : vector<8x96xf32>
    %c0_18 = arith.constant 0 : index
    %c0_19 = arith.constant 0 : index
    %28 = vector.load %arg13[%c0_18, %c0_19] : memref<8x96xf32, #tpu.memory_space<vmem>>, vector<8x96xf32>
    tpu.vector_store %arg13[%c0_18, %c0_19], %27 {strides = array<i32>} : memref<8x96xf32, #tpu.memory_space<vmem>>, vector<8x96xf32>,
    %c0_i32_20 = arith.constant 0 : i32
    %29 = arith.cmpi eq, %arg3, %c0_i32_20 : i32
    %30 = arith.extui %29 : i1 to i32
    %c0_i32_21 = arith.constant 0 : i32
    %31 = arith.cmpi ne, %30, %c0_i32_21 : i32
    scf.if %31 {
      %c0_22 = arith.constant 0 : index
      %c0_23 = arith.constant 0 : index
      %32 = vector.load %arg12[%c0_22, %c0_23] : memref<8x96xf32, #tpu.memory_space<vmem>>, vector<8x96xf32>
      %c0_24 = arith.constant 0 : index
      %c0_25 = arith.constant 0 : index
      %33 = vector.load %arg8[%c0_24, %c0_25] : memref<1x96xf32, #tpu.memory_space<vmem>>, vector<1x96xf32>
      %34 = vector.broadcast %33 : vector<1x96xf32> to vector<8x96xf32>
      %35 = arith.addf %32, %34 : vector<8x96xf32>
      %c0_26 = arith.constant 0 : index
      %c0_27 = arith.constant 0 : index
      %36 = vector.load %arg13[%c0_26, %c0_27] : memref<8x96xf32, #tpu.memory_space<vmem>>, vector<8x96xf32>
      %c0_28 = arith.constant 0 : index
      %c0_29 = arith.constant 0 : index
      %37 = vector.load %arg9[%c0_28, %c0_29] : memref<1x96xf32, #tpu.memory_space<vmem>>, vector<1x96xf32>
      %38 = vector.broadcast %37 : vector<1x96xf32> to vector<8x96xf32>
      %39 = arith.addf %36, %38 : vector<8x96xf32>
      %40 = vector.extract_strided_slice %35 {offsets = [0, 0], sizes = [8, 8], strides = [1, 1]} : vector<8x96xf32> to vector<8x8xf32>
      %c0_30 = arith.constant 0 : index
      %c0_31 = arith.constant 0 : index
      %c0_32 = arith.constant 0 : index
      %c0_33 = arith.constant 0 : index
      %c0_34 = arith.constant 0 : index
      %41 = vector.load %arg10[%c0_30, %c0_31, %c0_32, %c0_33, %c0_34] : memref<1x4x3x8x8xf32, #tpu.memory_space<vmem>>, vector<1x1x1x8x8xf32>
      %42 = vector.shape_cast %41 : vector<1x1x1x8x8xf32> to vector<8x8xf32>
      %43 = vector.shape_cast %40 : vector<8x8xf32> to vector<1x1x1x8x8xf32>
      tpu.vector_store %arg10[%c0_30, %c0_31, %c0_32, %c0_33, %c0_34], %43 {strides = array<i32>} : memref<1x4x3x8x8xf32, #tpu.memory_space<vmem>>, vector<1x1x1x8x8xf32>,
      %44 = vector.extract_strided_slice %39 {offsets = [0, 0], sizes = [8, 8], strides = [1, 1]} : vector<8x96xf32> to vector<8x8xf32>
      %c0_35 = arith.constant 0 : index
      %c0_36 = arith.constant 0 : index
      %c0_37 = arith.constant 0 : index
      %c0_38 = arith.constant 0 : index
      %c0_39 = arith.constant 0 : index
      %45 = vector.load %arg11[%c0_35, %c0_36, %c0_37, %c0_38, %c0_39] : memref<1x4x3x8x8xf32, #tpu.memory_space<vmem>>, vector<1x1x1x8x8xf32>
      %46 = vector.shape_cast %45 : vector<1x1x1x8x8xf32> to vector<8x8xf32>
      %47 = vector.shape_cast %44 : vector<8x8xf32> to vector<1x1x1x8x8xf32>
      tpu.vector_store %arg11[%c0_35, %c0_36, %c0_37, %c0_38, %c0_39], %47 {strides = array<i32>} : memref<1x4x3x8x8xf32, #tpu.memory_space<vmem>>, vector<1x1x1x8x8xf32>,
      %48 = vector.extract_strided_slice %35 {offsets = [0, 8], sizes = [8, 8], strides = [1, 1]} : vector<8x96xf32> to vector<8x8xf32>
      %c0_40 = arith.constant 0 : index
      %c0_41 = arith.constant 0 : index
      %c1 = arith.constant 1 : index
      %c0_42 = arith.constant 0 : index
      %c0_43 = arith.constant 0 : index
      %49 = vector.load %arg10[%c0_40, %c0_41, %c1, %c0_42, %c0_43] : memref<1x4x3x8x8xf32, #tpu.memory_space<vmem>>, vector<1x1x1x8x8xf32>
      %50 = vector.shape_cast %49 : vector<1x1x1x8x8xf32> to vector<8x8xf32>
      %51 = vector.shape_cast %48 : vector<8x8xf32> to vector<1x1x1x8x8xf32>
      tpu.vector_store %arg10[%c0_40, %c0_41, %c1, %c0_42, %c0_43], %51 {strides = array<i32>} : memref<1x4x3x8x8xf32, #tpu.memory_space<vmem>>, vector<1x1x1x8x8xf32>,
      %52 = vector.extract_strided_slice %39 {offsets = [0, 8], sizes = [8, 8], strides = [1, 1]} : vector<8x96xf32> to vector<8x8xf32>
      %c0_44 = arith.constant 0 : index
      %c0_45 = arith.constant 0 : index
      %c1_46 = arith.constant 1 : index
      %c0_47 = arith.constant 0 : index
      %c0_48 = arith.constant 0 : index
      %53 = vector.load %arg11[%c0_44, %c0_45, %c1_46, %c0_47, %c0_48] : memref<1x4x3x8x8xf32, #tpu.memory_space<vmem>>, vector<1x1x1x8x8xf32>
      %54 = vector.shape_cast %53 : vector<1x1x1x8x8xf32> to vector<8x8xf32>
      %55 = vector.shape_cast %52 : vector<8x8xf32> to vector<1x1x1x8x8xf32>
      tpu.vector_store %arg11[%c0_44, %c0_45, %c1_46, %c0_47, %c0_48], %55 {strides = array<i32>} : memref<1x4x3x8x8xf32, #tpu.memory_space<vmem>>, vector<1x1x1x8x8xf32>,
      %56 = vector.extract_strided_slice %35 {offsets = [0, 16], sizes = [8, 8], strides = [1, 1]} : vector<8x96xf32> to vector<8x8xf32>
      %c0_49 = arith.constant 0 : index
      %c0_50 = arith.constant 0 : index
      %c2 = arith.constant 2 : index
      %c0_51 = arith.constant 0 : index
      %c0_52 = arith.constant 0 : index
      %57 = vector.load %arg10[%c0_49, %c0_50, %c2, %c0_51, %c0_52] : memref<1x4x3x8x8xf32, #tpu.memory_space<vmem>>, vector<1x1x1x8x8xf32>
      %58 = vector.shape_cast %57 : vector<1x1x1x8x8xf32> to vector<8x8xf32>
      %59 = vector.shape_cast %56 : vector<8x8xf32> to vector<1x1x1x8x8xf32>
      tpu.vector_store %arg10[%c0_49, %c0_50, %c2, %c0_51, %c0_52], %59 {strides = array<i32>} : memref<1x4x3x8x8xf32, #tpu.memory_space<vmem>>, vector<1x1x1x8x8xf32>,
      %60 = vector.extract_strided_slice %39 {offsets = [0, 16], sizes = [8, 8], strides = [1, 1]} : vector<8x96xf32> to vector<8x8xf32>
      %c0_53 = arith.constant 0 : index
      %c0_54 = arith.constant 0 : index
      %c2_55 = arith.constant 2 : index
      %c0_56 = arith.constant 0 : index
      %c0_57 = arith.constant 0 : index
      %61 = vector.load %arg11[%c0_53, %c0_54, %c2_55, %c0_56, %c0_57] : memref<1x4x3x8x8xf32, #tpu.memory_space<vmem>>, vector<1x1x1x8x8xf32>
      %62 = vector.shape_cast %61 : vector<1x1x1x8x8xf32> to vector<8x8xf32>
      %63 = vector.shape_cast %60 : vector<8x8xf32> to vector<1x1x1x8x8xf32>
      tpu.vector_store %arg11[%c0_53, %c0_54, %c2_55, %c0_56, %c0_57], %63 {strides = array<i32>} : memref<1x4x3x8x8xf32, #tpu.memory_space<vmem>>, vector<1x1x1x8x8xf32>,
      %64 = vector.extract_strided_slice %35 {offsets = [0, 24], sizes = [8, 8], strides = [1, 1]} : vector<8x96xf32> to vector<8x8xf32>
      %c0_58 = arith.constant 0 : index
      %c1_59 = arith.constant 1 : index
      %c0_60 = arith.constant 0 : index
      %c0_61 = arith.constant 0 : index
      %c0_62 = arith.constant 0 : index
      %65 = vector.load %arg10[%c0_58, %c1_59, %c0_60, %c0_61, %c0_62] : memref<1x4x3x8x8xf32, #tpu.memory_space<vmem>>, vector<1x1x1x8x8xf32>
      %66 = vector.shape_cast %65 : vector<1x1x1x8x8xf32> to vector<8x8xf32>
      %67 = vector.shape_cast %64 : vector<8x8xf32> to vector<1x1x1x8x8xf32>
      tpu.vector_store %arg10[%c0_58, %c1_59, %c0_60, %c0_61, %c0_62], %67 {strides = array<i32>} : memref<1x4x3x8x8xf32, #tpu.memory_space<vmem>>, vector<1x1x1x8x8xf32>,
      %68 = vector.extract_strided_slice %39 {offsets = [0, 24], sizes = [8, 8], strides = [1, 1]} : vector<8x96xf32> to vector<8x8xf32>
      %c0_63 = arith.constant 0 : index
      %c1_64 = arith.constant 1 : index
      %c0_65 = arith.constant 0 : index
      %c0_66 = arith.constant 0 : index
      %c0_67 = arith.constant 0 : index
      %69 = vector.load %arg11[%c0_63, %c1_64, %c0_65, %c0_66, %c0_67] : memref<1x4x3x8x8xf32, #tpu.memory_space<vmem>>, vector<1x1x1x8x8xf32>
      %70 = vector.shape_cast %69 : vector<1x1x1x8x8xf32> to vector<8x8xf32>
      %71 = vector.shape_cast %68 : vector<8x8xf32> to vector<1x1x1x8x8xf32>
      tpu.vector_store %arg11[%c0_63, %c1_64, %c0_65, %c0_66, %c0_67], %71 {strides = array<i32>} : memref<1x4x3x8x8xf32, #tpu.memory_space<vmem>>, vector<1x1x1x8x8xf32>,
      %72 = vector.extract_strided_slice %35 {offsets = [0, 32], sizes = [8, 8], strides = [1, 1]} : vector<8x96xf32> to vector<8x8xf32>
      %c0_68 = arith.constant 0 : index
      %c1_69 = arith.constant 1 : index
      %c1_70 = arith.constant 1 : index
      %c0_71 = arith.constant 0 : index
      %c0_72 = arith.constant 0 : index
      %73 = vector.load %arg10[%c0_68, %c1_69, %c1_70, %c0_71, %c0_72] : memref<1x4x3x8x8xf32, #tpu.memory_space<vmem>>, vector<1x1x1x8x8xf32>
      %74 = vector.shape_cast %73 : vector<1x1x1x8x8xf32> to vector<8x8xf32>
      %75 = vector.shape_cast %72 : vector<8x8xf32> to vector<1x1x1x8x8xf32>
      tpu.vector_store %arg10[%c0_68, %c1_69, %c1_70, %c0_71, %c0_72], %75 {strides = array<i32>} : memref<1x4x3x8x8xf32, #tpu.memory_space<vmem>>, vector<1x1x1x8x8xf32>,
      %76 = vector.extract_strided_slice %39 {offsets = [0, 32], sizes = [8, 8], strides = [1, 1]} : vector<8x96xf32> to vector<8x8xf32>
      %c0_73 = arith.constant 0 : index
      %c1_74 = arith.constant 1 : index
      %c1_75 = arith.constant 1 : index
      %c0_76 = arith.constant 0 : index
      %c0_77 = arith.constant 0 : index
      %77 = vector.load %arg11[%c0_73, %c1_74, %c1_75, %c0_76, %c0_77] : memref<1x4x3x8x8xf32, #tpu.memory_space<vmem>>, vector<1x1x1x8x8xf32>
      %78 = vector.shape_cast %77 : vector<1x1x1x8x8xf32> to vector<8x8xf32>
      %79 = vector.shape_cast %76 : vector<8x8xf32> to vector<1x1x1x8x8xf32>
      tpu.vector_store %arg11[%c0_73, %c1_74, %c1_75, %c0_76, %c0_77], %79 {strides = array<i32>} : memref<1x4x3x8x8xf32, #tpu.memory_space<vmem>>, vector<1x1x1x8x8xf32>,
      %80 = vector.extract_strided_slice %35 {offsets = [0, 40], sizes = [8, 8], strides = [1, 1]} : vector<8x96xf32> to vector<8x8xf32>
      %c0_78 = arith.constant 0 : index
      %c1_79 = arith.constant 1 : index
      %c2_80 = arith.constant 2 : index
      %c0_81 = arith.constant 0 : index
      %c0_82 = arith.constant 0 : index
      %81 = vector.load %arg10[%c0_78, %c1_79, %c2_80, %c0_81, %c0_82] : memref<1x4x3x8x8xf32, #tpu.memory_space<vmem>>, vector<1x1x1x8x8xf32>
      %82 = vector.shape_cast %81 : vector<1x1x1x8x8xf32> to vector<8x8xf32>
      %83 = vector.shape_cast %80 : vector<8x8xf32> to vector<1x1x1x8x8xf32>
      tpu.vector_store %arg10[%c0_78, %c1_79, %c2_80, %c0_81, %c0_82], %83 {strides = array<i32>} : memref<1x4x3x8x8xf32, #tpu.memory_space<vmem>>, vector<1x1x1x8x8xf32>,
      %84 = vector.extract_strided_slice %39 {offsets = [0, 40], sizes = [8, 8], strides = [1, 1]} : vector<8x96xf32> to vector<8x8xf32>
      %c0_83 = arith.constant 0 : index
      %c1_84 = arith.constant 1 : index
      %c2_85 = arith.constant 2 : index
      %c0_86 = arith.constant 0 : index
      %c0_87 = arith.constant 0 : index
      %85 = vector.load %arg11[%c0_83, %c1_84, %c2_85, %c0_86, %c0_87] : memref<1x4x3x8x8xf32, #tpu.memory_space<vmem>>, vector<1x1x1x8x8xf32>
      %86 = vector.shape_cast %85 : vector<1x1x1x8x8xf32> to vector<8x8xf32>
      %87 = vector.shape_cast %84 : vector<8x8xf32> to vector<1x1x1x8x8xf32>
      tpu.vector_store %arg11[%c0_83, %c1_84, %c2_85, %c0_86, %c0_87], %87 {strides = array<i32>} : memref<1x4x3x8x8xf32, #tpu.memory_space<vmem>>, vector<1x1x1x8x8xf32>,
      %88 = vector.extract_strided_slice %35 {offsets = [0, 48], sizes = [8, 8], strides = [1, 1]} : vector<8x96xf32> to vector<8x8xf32>
      %c0_88 = arith.constant 0 : index
      %c2_89 = arith.constant 2 : index
      %c0_90 = arith.constant 0 : index
      %c0_91 = arith.constant 0 : index
      %c0_92 = arith.constant 0 : index
      %89 = vector.load %arg10[%c0_88, %c2_89, %c0_90, %c0_91, %c0_92] : memref<1x4x3x8x8xf32, #tpu.memory_space<vmem>>, vector<1x1x1x8x8xf32>
      %90 = vector.shape_cast %89 : vector<1x1x1x8x8xf32> to vector<8x8xf32>
      %91 = vector.shape_cast %88 : vector<8x8xf32> to vector<1x1x1x8x8xf32>
      tpu.vector_store %arg10[%c0_88, %c2_89, %c0_90, %c0_91, %c0_92], %91 {strides = array<i32>} : memref<1x4x3x8x8xf32, #tpu.memory_space<vmem>>, vector<1x1x1x8x8xf32>,
      %92 = vector.extract_strided_slice %39 {offsets = [0, 48], sizes = [8, 8], strides = [1, 1]} : vector<8x96xf32> to vector<8x8xf32>
      %c0_93 = arith.constant 0 : index
      %c2_94 = arith.constant 2 : index
      %c0_95 = arith.constant 0 : index
      %c0_96 = arith.constant 0 : index
      %c0_97 = arith.constant 0 : index
      %93 = vector.load %arg11[%c0_93, %c2_94, %c0_95, %c0_96, %c0_97] : memref<1x4x3x8x8xf32, #tpu.memory_space<vmem>>, vector<1x1x1x8x8xf32>
      %94 = vector.shape_cast %93 : vector<1x1x1x8x8xf32> to vector<8x8xf32>
      %95 = vector.shape_cast %92 : vector<8x8xf32> to vector<1x1x1x8x8xf32>
      tpu.vector_store %arg11[%c0_93, %c2_94, %c0_95, %c0_96, %c0_97], %95 {strides = array<i32>} : memref<1x4x3x8x8xf32, #tpu.memory_space<vmem>>, vector<1x1x1x8x8xf32>,
      %96 = vector.extract_strided_slice %35 {offsets = [0, 56], sizes = [8, 8], strides = [1, 1]} : vector<8x96xf32> to vector<8x8xf32>
      %c0_98 = arith.constant 0 : index
      %c2_99 = arith.constant 2 : index
      %c1_100 = arith.constant 1 : index
      %c0_101 = arith.constant 0 : index
      %c0_102 = arith.constant 0 : index
      %97 = vector.load %arg10[%c0_98, %c2_99, %c1_100, %c0_101, %c0_102] : memref<1x4x3x8x8xf32, #tpu.memory_space<vmem>>, vector<1x1x1x8x8xf32>
      %98 = vector.shape_cast %97 : vector<1x1x1x8x8xf32> to vector<8x8xf32>
      %99 = vector.shape_cast %96 : vector<8x8xf32> to vector<1x1x1x8x8xf32>
      tpu.vector_store %arg10[%c0_98, %c2_99, %c1_100, %c0_101, %c0_102], %99 {strides = array<i32>} : memref<1x4x3x8x8xf32, #tpu.memory_space<vmem>>, vector<1x1x1x8x8xf32>,
      %100 = vector.extract_strided_slice %39 {offsets = [0, 56], sizes = [8, 8], strides = [1, 1]} : vector<8x96xf32> to vector<8x8xf32>
      %c0_103 = arith.constant 0 : index
      %c2_104 = arith.constant 2 : index
      %c1_105 = arith.constant 1 : index
      %c0_106 = arith.constant 0 : index
      %c0_107 = arith.constant 0 : index
      %101 = vector.load %arg11[%c0_103, %c2_104, %c1_105, %c0_106, %c0_107] : memref<1x4x3x8x8xf32, #tpu.memory_space<vmem>>, vector<1x1x1x8x8xf32>
      %102 = vector.shape_cast %101 : vector<1x1x1x8x8xf32> to vector<8x8xf32>
      %103 = vector.shape_cast %100 : vector<8x8xf32> to vector<1x1x1x8x8xf32>
      tpu.vector_store %arg11[%c0_103, %c2_104, %c1_105, %c0_106, %c0_107], %103 {strides = array<i32>} : memref<1x4x3x8x8xf32, #tpu.memory_space<vmem>>, vector<1x1x1x8x8xf32>,
      %104 = vector.extract_strided_slice %35 {offsets = [0, 64], sizes = [8, 8], strides = [1, 1]} : vector<8x96xf32> to vector<8x8xf32>
      %c0_108 = arith.constant 0 : index
      %c2_109 = arith.constant 2 : index
      %c2_110 = arith.constant 2 : index
      %c0_111 = arith.constant 0 : index
      %c0_112 = arith.constant 0 : index
      %105 = vector.load %arg10[%c0_108, %c2_109, %c2_110, %c0_111, %c0_112] : memref<1x4x3x8x8xf32, #tpu.memory_space<vmem>>, vector<1x1x1x8x8xf32>
      %106 = vector.shape_cast %105 : vector<1x1x1x8x8xf32> to vector<8x8xf32>
      %107 = vector.shape_cast %104 : vector<8x8xf32> to vector<1x1x1x8x8xf32>
      tpu.vector_store %arg10[%c0_108, %c2_109, %c2_110, %c0_111, %c0_112], %107 {strides = array<i32>} : memref<1x4x3x8x8xf32, #tpu.memory_space<vmem>>, vector<1x1x1x8x8xf32>,
      %108 = vector.extract_strided_slice %39 {offsets = [0, 64], sizes = [8, 8], strides = [1, 1]} : vector<8x96xf32> to vector<8x8xf32>
      %c0_113 = arith.constant 0 : index
      %c2_114 = arith.constant 2 : index
      %c2_115 = arith.constant 2 : index
      %c0_116 = arith.constant 0 : index
      %c0_117 = arith.constant 0 : index
      %109 = vector.load %arg11[%c0_113, %c2_114, %c2_115, %c0_116, %c0_117] : memref<1x4x3x8x8xf32, #tpu.memory_space<vmem>>, vector<1x1x1x8x8xf32>
      %110 = vector.shape_cast %109 : vector<1x1x1x8x8xf32> to vector<8x8xf32>
      %111 = vector.shape_cast %108 : vector<8x8xf32> to vector<1x1x1x8x8xf32>
      tpu.vector_store %arg11[%c0_113, %c2_114, %c2_115, %c0_116, %c0_117], %111 {strides = array<i32>} : memref<1x4x3x8x8xf32, #tpu.memory_space<vmem>>, vector<1x1x1x8x8xf32>,
      %112 = vector.extract_strided_slice %35 {offsets = [0, 72], sizes = [8, 8], strides = [1, 1]} : vector<8x96xf32> to vector<8x8xf32>
      %c0_118 = arith.constant 0 : index
      %c3 = arith.constant 3 : index
      %c0_119 = arith.constant 0 : index
      %c0_120 = arith.constant 0 : index
      %c0_121 = arith.constant 0 : index
      %113 = vector.load %arg10[%c0_118, %c3, %c0_119, %c0_120, %c0_121] : memref<1x4x3x8x8xf32, #tpu.memory_space<vmem>>, vector<1x1x1x8x8xf32>
      %114 = vector.shape_cast %113 : vector<1x1x1x8x8xf32> to vector<8x8xf32>
      %115 = vector.shape_cast %112 : vector<8x8xf32> to vector<1x1x1x8x8xf32>
      tpu.vector_store %arg10[%c0_118, %c3, %c0_119, %c0_120, %c0_121], %115 {strides = array<i32>} : memref<1x4x3x8x8xf32, #tpu.memory_space<vmem>>, vector<1x1x1x8x8xf32>,
      %116 = vector.extract_strided_slice %39 {offsets = [0, 72], sizes = [8, 8], strides = [1, 1]} : vector<8x96xf32> to vector<8x8xf32>
      %c0_122 = arith.constant 0 : index
      %c3_123 = arith.constant 3 : index
      %c0_124 = arith.constant 0 : index
      %c0_125 = arith.constant 0 : index
      %c0_126 = arith.constant 0 : index
      %117 = vector.load %arg11[%c0_122, %c3_123, %c0_124, %c0_125, %c0_126] : memref<1x4x3x8x8xf32, #tpu.memory_space<vmem>>, vector<1x1x1x8x8xf32>
      %118 = vector.shape_cast %117 : vector<1x1x1x8x8xf32> to vector<8x8xf32>
      %119 = vector.shape_cast %116 : vector<8x8xf32> to vector<1x1x1x8x8xf32>
      tpu.vector_store %arg11[%c0_122, %c3_123, %c0_124, %c0_125, %c0_126], %119 {strides = array<i32>} : memref<1x4x3x8x8xf32, #tpu.memory_space<vmem>>, vector<1x1x1x8x8xf32>,
      %120 = vector.extract_strided_slice %35 {offsets = [0, 80], sizes = [8, 8], strides = [1, 1]} : vector<8x96xf32> to vector<8x8xf32>
      %c0_127 = arith.constant 0 : index
      %c3_128 = arith.constant 3 : index
      %c1_129 = arith.constant 1 : index
      %c0_130 = arith.constant 0 : index
      %c0_131 = arith.constant 0 : index
      %121 = vector.load %arg10[%c0_127, %c3_128, %c1_129, %c0_130, %c0_131] : memref<1x4x3x8x8xf32, #tpu.memory_space<vmem>>, vector<1x1x1x8x8xf32>
      %122 = vector.shape_cast %121 : vector<1x1x1x8x8xf32> to vector<8x8xf32>
      %123 = vector.shape_cast %120 : vector<8x8xf32> to vector<1x1x1x8x8xf32>
      tpu.vector_store %arg10[%c0_127, %c3_128, %c1_129, %c0_130, %c0_131], %123 {strides = array<i32>} : memref<1x4x3x8x8xf32, #tpu.memory_space<vmem>>, vector<1x1x1x8x8xf32>,
      %124 = vector.extract_strided_slice %39 {offsets = [0, 80], sizes = [8, 8], strides = [1, 1]} : vector<8x96xf32> to vector<8x8xf32>
      %c0_132 = arith.constant 0 : index
      %c3_133 = arith.constant 3 : index
      %c1_134 = arith.constant 1 : index
      %c0_135 = arith.constant 0 : index
      %c0_136 = arith.constant 0 : index
      %125 = vector.load %arg11[%c0_132, %c3_133, %c1_134, %c0_135, %c0_136] : memref<1x4x3x8x8xf32, #tpu.memory_space<vmem>>, vector<1x1x1x8x8xf32>
      %126 = vector.shape_cast %125 : vector<1x1x1x8x8xf32> to vector<8x8xf32>
      %127 = vector.shape_cast %124 : vector<8x8xf32> to vector<1x1x1x8x8xf32>
      tpu.vector_store %arg11[%c0_132, %c3_133, %c1_134, %c0_135, %c0_136], %127 {strides = array<i32>} : memref<1x4x3x8x8xf32, #tpu.memory_space<vmem>>, vector<1x1x1x8x8xf32>,
      %128 = vector.extract_strided_slice %35 {offsets = [0, 88], sizes = [8, 8], strides = [1, 1]} : vector<8x96xf32> to vector<8x8xf32>
      %c0_137 = arith.constant 0 : index
      %c3_138 = arith.constant 3 : index
      %c2_139 = arith.constant 2 : index
      %c0_140 = arith.constant 0 : index
      %c0_141 = arith.constant 0 : index
      %129 = vector.load %arg10[%c0_137, %c3_138, %c2_139, %c0_140, %c0_141] : memref<1x4x3x8x8xf32, #tpu.memory_space<vmem>>, vector<1x1x1x8x8xf32>
      %130 = vector.shape_cast %129 : vector<1x1x1x8x8xf32> to vector<8x8xf32>
      %131 = vector.shape_cast %128 : vector<8x8xf32> to vector<1x1x1x8x8xf32>
      tpu.vector_store %arg10[%c0_137, %c3_138, %c2_139, %c0_140, %c0_141], %131 {strides = array<i32>} : memref<1x4x3x8x8xf32, #tpu.memory_space<vmem>>, vector<1x1x1x8x8xf32>,
      %132 = vector.extract_strided_slice %39 {offsets = [0, 88], sizes = [8, 8], strides = [1, 1]} : vector<8x96xf32> to vector<8x8xf32>
      %c0_142 = arith.constant 0 : index
      %c3_143 = arith.constant 3 : index
      %c2_144 = arith.constant 2 : index
      %c0_145 = arith.constant 0 : index
      %c0_146 = arith.constant 0 : index
      %133 = vector.load %arg11[%c0_142, %c3_143, %c2_144, %c0_145, %c0_146] : memref<1x4x3x8x8xf32, #tpu.memory_space<vmem>>, vector<1x1x1x8x8xf32>
      %134 = vector.shape_cast %133 : vector<1x1x1x8x8xf32> to vector<8x8xf32>
      %135 = vector.shape_cast %132 : vector<8x8xf32> to vector<1x1x1x8x8xf32>
      tpu.vector_store %arg11[%c0_142, %c3_143, %c2_144, %c0_145, %c0_146], %135 {strides = array<i32>} : memref<1x4x3x8x8xf32, #tpu.memory_space<vmem>>, vector<1x1x1x8x8xf32>,
    } else {
    }
    return
  }
  func.func @transform_0(%arg0: i32, %arg1: i32, %arg2: i32, %arg3: i32) -> (i32, i32, i32) {
    %c0_i32 = arith.constant 0 : i32
    return %arg0, %arg1, %arg3 : i32, i32, i32
  }
  func.func @transform_1(%arg0: i32, %arg1: i32, %arg2: i32, %arg3: i32) -> (i32, i32, i32) {
    %c0_i32 = arith.constant 0 : i32
    return %arg0, %arg1, %arg3 : i32, i32, i32
  }
  func.func @transform_2(%arg0: i32, %arg1: i32, %arg2: i32, %arg3: i32) -> (i32, i32) {
    %c0_i32 = arith.constant 0 : i32
    return %arg3, %arg2 : i32, i32
  }
  func.func @transform_3(%arg0: i32, %arg1: i32, %arg2: i32, %arg3: i32) -> (i32, i32) {
    %c0_i32 = arith.constant 0 : i32
    return %arg3, %arg2 : i32, i32
  }
  func.func @transform_4(%arg0: i32, %arg1: i32, %arg2: i32, %arg3: i32) -> (i32, i32) {
    %c0_i32 = arith.constant 0 : i32
    %c0_i32_0 = arith.constant 0 : i32
    return %c0_i32, %arg2 : i32, i32
  }
  func.func @transform_5(%arg0: i32, %arg1: i32, %arg2: i32, %arg3: i32) -> (i32, i32) {
    %c0_i32 = arith.constant 0 : i32
    %c0_i32_0 = arith.constant 0 : i32
    return %c0_i32, %arg2 : i32, i32
  }
  func.func @transform_6(%arg0: i32, %arg1: i32, %arg2: i32, %arg3: i32) -> (i32, i32, i32, i32, i32) {
    %c0_i32 = arith.constant 0 : i32
    %c0_i32_0 = arith.constant 0 : i32
    %c0_i32_1 = arith.constant 0 : i32
    return %arg0, %arg2, %c0_i32, %arg1, %c0_i32_0 : i32, i32, i32, i32, i32
  }
  func.func @transform_7(%arg0: i32, %arg1: i32, %arg2: i32, %arg3: i32) -> (i32, i32, i32, i32, i32) {
    %c0_i32 = arith.constant 0 : i32
    %c0_i32_0 = arith.constant 0 : i32
    %c0_i32_1 = arith.constant 0 : i32
    return %arg0, %arg2, %c0_i32, %arg1, %c0_i32_0 : i32, i32, i32, i32, i32
  }
}

</mosaic_0001>

<bundles_post_ra>
// kernel: tpu_custom_call.1
= control target key start
LH: loop header
LB: loop body
LE: loop exit
PB: predicated region body
PF: predicated region fallthrough
CT: control target
= control target key end

     0   :  { %s1936_s0 = inlined_call_operand.hbm [shape: f32[2,8,32], index: 0, kind: input, shape index: {}]   ;;  %s1937_s1 = inlined_call_operand.hbm [shape: f32[2,8,32], index: 1, kind: input, shape index: {}]   ;;  %s1938_s2 = inlined_call_operand.hbm [shape: f32[32,96], index: 2, kind: input, shape index: {}]   ;;  %s1939_s3 = inlined_call_operand.hbm [shape: f32[32,96], index: 3, kind: input, shape index: {}]   ;;  %s1940_s4 = inlined_call_operand.vmem [shape: f32[1,96], index: 4, kind: input, shape index: {}]   ;;  %s1941_s5 = inlined_call_operand.vmem [shape: f32[1,96], index: 5, kind: input, shape index: {}]   ;;  %s1942_s6 = inlined_call_operand.hbm [shape: f32[2,4,3,8,8], index: 6, kind: output, shape index: {0}]   ;;  %s1943_s7 = inlined_call_operand.hbm [shape: f32[2,4,3,8,8], index: 7, kind: output, shape index: {1}]  }
   0x1   :  { %1951 = sst [smem:[#allocation25_spill]] %s1938_s2 }
   0x2   :  { %1952 = sst [smem:[#allocation26_spill]] %s1939_s3 }
   0x3   :  { %13 = vsyncpa [#allocation5], 0 }
   0x4   :  { %15 = vsyncpa [#allocation5 + $0x1], 0 }
   0x5   :  { %16 = vsyncpa [#allocation8], 0 }
   0x6   :  { %18 = vsyncpa [#allocation8 + $0x1], 0 }
   0x7   :  { %19 = vsyncpa [#allocation11], 0 }
   0x8   :  { %20 = vsyncpa [#allocation6], 0 }
   0x9   :  { %22 = vsyncpa [#allocation6 + $0x1], 0 }
   0xa   :  { %23 = vsyncpa [#allocation14], 0 }
   0xb   :  { %25 = vsyncpa [#allocation14 + $0x1], 0  ;;  %s1528_s24 = smov 0   ;;  %s1530_s25 = smov 0  }
   0xc   :  { %s1532_s26 = smov 0   ;;  %s1534_s27 = smov 0  }
   0xd   :  { %s1536_s28 = smov 0   ;;  %s1538_s29 = smov 0  }
   0xe LB: > { %1953 = sst [smem:[#allocation21_spill]] %s1459_s28  ;;  %s1559_s30 = sadd.s32 4294967295, %s1463_s29   ;;  %s1463_s29 = sphi %s1538_s29, %s31_s29   ;;  %s1459_s28 = sphi %s1536_s28, %s1978_s28   ;;  %s1455_s27 = sphi %s1534_s27, %s1977_s27   ;;  %s1451_s26 = sphi %s1532_s26, %s1981_s26   ;;  %s1447_s25 = sphi %s1530_s25, %s1980_s25   ;;  %s1443_s24 = sphi %s1528_s24, %s1979_s24  }
   0xf   : > { %s1028_s8 = sadd.s32 4294967294, %s1463_s29   ;;  %p81_p0 = scmp.ne.s32.totalorder %s1447_s25, %s1443_s24 }
  0x10   : > { %p1944_p1 = scmp.eq.s32.totalorder %s1559_s30, 0  ;;  %p253_p3 = scmp.eq.s32.totalorder %s1028_s8, 1 }
  0x11   : > { %p1029_p5 = scmp.ge.s32.totalorder %s1463_s29, 1  ;;  %p290_p7 = scmp.lt.s32.totalorder %s1463_s29, 3 }
  0x12   : > { %p1568_p4 = por %p1944_p1, %p81_p0  ;;  %p1573_p6 = por %p253_p3, %p81_p0 }
  0x13   : > { %p1578_p8 = pnand %p1029_p5, %p290_p7  ;;  %s1465_s12 = smov [#allocation9]  }
  0x14   : > { %s1954_s9 = scalar_select %p1568_p4, 1, 0 }
  0x15   : > { %s1955_s10 = scalar_select %p1573_p6, 1, 0 }
  0x16   : > { %s1957_s11 = scalar_select %p1578_p8, 1, 0 }
  0x17   : > { %1956 = sst [smem:[#allocation22_spill]] %s1955_s10  ;;  %s306_s13 = sshll.u32 %s1465_s12, 4  ;;  %s1582_s13 = int_to_ptr.vmem [resolvable:$true] %s306_s13 }
  0x18   : > { %p1127_p9 = pneg %p1578_p8  ;;  %s1466_s15 = smov [#allocation10]  }
  0x19   : > { %s323_s16 = sshll.u32 %s1466_s15, 4  ;;  %s1959_s2 = sld [smem:[#allocation25_spill]]  ;;  %s1593_s16 = int_to_ptr.vmem [resolvable:$true] %s323_s16 }
  0x1a   : > { %p1589_p11 = pnand %p1127_p9, %p1944_p1 }
  0x1c   : > { %p1223_p13 = pneg %p1589_p11 }
  0x1f   : > { %s1221_s19 = scalar_lea.hbm %s1959_s2, 512 }
  0x20   : > { %p1222_p12 = scmp.ne.s32.totalorder %s1959_s2, %s1221_s19  ;;  %p1228_p5 = scmp.lt.u32.totalorder %s1221_s19, %s1959_s2 }
  0x22   : > { %p1224_p0 = pnand %p1223_p13, %p1222_p12 }
  0x24   : > { %p1225_p3 = pneg %p1224_p0 }
  0x26   : > { %p1230_p7 = pnand %p1228_p5, %p1225_p3 }
  0x28   : > { %1233 = shalt.err (!%p1230_p7)
}
  0x29   : > { %s1234_s8 = scalar_lea.vmem %s1582_s13, 512  ;;  %p1242_p2 = scmp.lt.s32.totalorder %s1582_s13, %s1582_s13 }
  0x2a   : > { %p1235_p9 = scmp.ne.s32.totalorder %s1582_s13, %s1234_s8  ;;  %p1243_p12 = scmp.lt.s32.totalorder %s1234_s8, %s1234_s8 }
  0x2c   : > { %p1237_p10 = pnand %p1235_p9, %p1223_p13  ;;  %p1244_p0 = por %p1243_p12, %p1242_p2 }
  0x2e   : > { %p1238_p1 = pneg %p1237_p10 }
  0x30   : > { %p1245_p6 = pnand %p1244_p0, %p1238_p1 }
  0x32   : > { %1248 = shalt.err (!%p1245_p6)
}
  0x33   : > { %s1467_s12 = smov 128   ;;  %s1468_s15 = smov 8  }
  0x34   : > { %1130 = dma.hbm_to_vmem [thread:$0]  (!%p1589_p11), %s1959_s2, 512, %s1582_s13, [#allocation8], %s1467_s12, %s1467_s12, %s1468_s15  }
  0x35   : > { %s1960_s3 = sld [smem:[#allocation26_spill]] }
  0x3b   : > { %s1249_s21 = scalar_lea.hbm %s1960_s3, 512 }
  0x3c   : > { %p1250_p2 = scmp.ne.s32.totalorder %s1960_s3, %s1249_s21  ;;  %p1256_p10 = scmp.lt.u32.totalorder %s1249_s21, %s1960_s3 }
  0x3e   : > { %p1252_p1 = pnand %p1250_p2, %p1223_p13 }
  0x40   : > { %p1253_p6 = pneg %p1252_p1 }
  0x42   : > { %p1258_p3 = pnand %p1256_p10, %p1253_p6 }
  0x44   : > { %1261 = shalt.err (!%p1258_p3)
}
  0x45   : > { %s1262_s13 = scalar_lea.vmem %s1593_s16, 512  ;;  %p1270_p12 = scmp.lt.s32.totalorder %s1593_s16, %s1593_s16 }
  0x46   : > { %p1263_p5 = scmp.ne.s32.totalorder %s1593_s16, %s1262_s13  ;;  %p1271_p0 = scmp.lt.s32.totalorder %s1262_s13, %s1262_s13 }
  0x48   : > { %p1265_p7 = pnand %p1263_p5, %p1223_p13  ;;  %p1272_p2 = por %p1271_p0, %p1270_p12 }
  0x4a   : > { %p1266_p9 = pneg %p1265_p7 }
  0x4c   : > { %p1273_p1 = pnand %p1272_p2, %p1266_p9 }
  0x4e   : > { %1276 = shalt.err (!%p1273_p1)
}
  0x4f   : > { %1133 = dma.hbm_to_vmem [thread:$0]  (!%p1589_p11), %s1960_s3, 512, %s1593_s16, [#allocation11], %s1467_s12, %s1467_s12, %s1468_s15  }
  0x50   : > { %s57_s18 = sadd.s32 1, %s1459_s28  ;;  %s68_s19 = sadd.s32 1, %s1451_s26 }
  0x51   : > { %p59_p13 = scmp.ge.s32.totalorder %s57_s18, 2  ;;  %p75_p6 = scmp.ne.s32.totalorder %s1451_s26, %s1447_s25 }
  0x52   : > { %p76_p10 = scmp.eq.s32.totalorder %s1463_s29, 0  ;;  %p1150_p3 = scmp.lt.s32.totalorder %s1463_s29, 2 }
  0x53   : > { %s1983_s18 = smov (%p59_p13, %s57_s18), 0  ;;  %p1962_p7 = scmp.eq.s32.totalorder %s1559_s30, 1 }
  0x54   : > { %1961 = sst [smem:[#allocation23_spill]] %s1983_s18  ;;  %p77_p5 = por %p76_p10, %p75_p6 }
  0x55   : > { %p1657_p9 = por %p1962_p7, %p75_p6  ;;  %s61_s20 = ssub.s32 %s1459_s28, %s1983_s18 }
  0x56   : > { %s349_s21 = sand.u32 1, %s1451_s26   ;;  %p66_p12 = scmp.eq.s32.totalorder %s61_s20, 0 }
  0x57   : > { %s1963_s14 = scalar_select %p1657_p9, 1, 0 }
  0x58   : > { %s1664_s16 = sshll.u32 %s349_s21, 3  ;;  %s1036_s12 = sshll.u32 %s1459_s28, 7 }
  0x59   : > { %s1668_s15 = scalar_select %p66_p12, %s1451_s26, %s68_s19  }
  0x5a   : > { %s1673_s8 = scalar_lea.hbm %s1936_s0, %s1036_s12  ;;  %s353_s13 = scalar_lea.vmem [#allocation4], %s1664_s16 }
  0x5b   : > { %1964 = sst [smem:[#allocation24_spill]] %s1668_s15  ;;  %s362_s10 = sshll.u32 %s353_s13, 4  ;;  %s1682_s10 = int_to_ptr.vmem [resolvable:$true] %s362_s10 }
  0x5c   : > { %p1678_p11 = pnand %p1150_p3, %p77_p5  ;;  %s1687_s22 = scalar_lea.hbm %s1937_s1, %s1036_s12 }
  0x5d   : > { %s350_s23 = scalar_lea.sflag [#allocation5], %s349_s21  ;;  %s1277_s2 = scalar_lea.hbm %s1673_s8, 128 }
  0x5e   : > { %p1278_p0 = scmp.ne.s32.totalorder %s1673_s8, %s1277_s2  ;;  %p1279_p2 = pneg %p1678_p11 }
  0x5f   : > { %s1282_s18 = scalar_lea.hbm %s1936_s0, 256  ;;  %p1283_p6 = scmp.lt.u32.totalorder %s1673_s8, %s1936_s0 }
  0x60   : > { %p1280_p1 = pnand %p1279_p2, %p1278_p0  ;;  %p1284_p10 = scmp.lt.u32.totalorder %s1282_s18, %s1277_s2 }
  0x61   : > { %p1286_p5 = scmp.lt.u32.totalorder %s1277_s2, %s1673_s8 }
  0x62   : > { %p1281_p13 = pneg %p1280_p1  ;;  %p1285_p3 = por %p1284_p10, %p1283_p6 }
  0x64   : > { %p1287_p7 = por %p1286_p5, %p1285_p3 }
  0x66   : > { %p1288_p12 = pnand %p1287_p7, %p1281_p13 }
  0x68   : > { %1291 = shalt.err (!%p1288_p12)
}
  0x69   : > { %s1292_s21 = scalar_lea.vmem %s1682_s10, 128  ;;  %s1469_s3 = smov [#allocation4]  }
  0x6a   : > { %p1293_p0 = scmp.ne.s32.totalorder %s1682_s10, %s1292_s21  ;;  %s1297_s12 = sshll.u32 %s1469_s3, 4  ;;  %s1298_s12 = int_to_ptr.vmem [resolvable:$false] %s1297_s12 }
  0x6b   : > { %s1299_s28 = scalar_lea.vmem %s1298_s12, 256  ;;  %p1300_p4 = scmp.lt.s32.totalorder %s1682_s10, %s1298_s12 }
  0x6c   : > { %p1295_p1 = pnand %p1293_p0, %p1279_p2  ;;  %p1301_p6 = scmp.lt.s32.totalorder %s1299_s28, %s1292_s21 }
  0x6e   : > { %p1296_p9 = pneg %p1295_p1  ;;  %p1302_p10 = por %p1301_p6, %p1300_p4 }
  0x70   : > { %p1303_p3 = pnand %p1302_p10, %p1296_p9 }
  0x72   : > { %1306 = shalt.err (!%p1303_p3)
}
  0x73   : > { %1137 = dma.hbm_to_vmem [thread:$0]  (!%p1678_p11), %s1673_s8, 128, %s1682_s10, %s350_s23  }
  0x74   : > { %s369_s2 = sand.u32 1, %s1463_s29   ;;  %s373_s18 = scalar_lea.vmem [#allocation7], %s1664_s16 }
  0x75   : > { %s382_s15 = sshll.u32 %s373_s18, 4  ;;  %s370_s19 = scalar_lea.sflag [#allocation8], %s369_s2  ;;  %s383_s15 = int_to_ptr.vmem [resolvable:$true] %s382_s15 }
  0x76   : > { %s1307_s20 = scalar_lea.hbm %s1687_s22, 128  ;;  %s1312_s3 = scalar_lea.hbm %s1937_s1, 256 }
  0x77   : > { %p1308_p4 = scmp.ne.s32.totalorder %s1687_s22, %s1307_s20  ;;  %p1313_p5 = scmp.lt.u32.totalorder %s1687_s22, %s1937_s1 }
  0x78   : > { %p1314_p7 = scmp.lt.u32.totalorder %s1312_s3, %s1307_s20  ;;  %p1316_p0 = scmp.lt.u32.totalorder %s1307_s20, %s1687_s22 }
  0x79   : > { %p1310_p9 = pnand %p1308_p4, %p1279_p2 }
  0x7a   : > { %p1315_p12 = por %p1314_p7, %p1313_p5 }
  0x7b   : > { %p1311_p13 = pneg %p1310_p9 }
  0x7c   : > { %p1317_p1 = por %p1316_p0, %p1315_p12 }
  0x7e   : > { %p1318_p6 = pnand %p1317_p1, %p1311_p13 }
  0x80   : > { %1321 = shalt.err (!%p1318_p6)
}
  0x81   : > { %s1322_s16 = scalar_lea.vmem %s383_s15, 128  ;;  %s1470_s8 = smov [#allocation7]  }
  0x82   : > { %p1323_p10 = scmp.ne.s32.totalorder %s383_s15, %s1322_s16  ;;  %s1327_s10 = sshll.u32 %s1470_s8, 4  ;;  %s1328_s10 = int_to_ptr.vmem [resolvable:$false] %s1327_s10 }
  0x83   : > { %s1329_s23 = scalar_lea.vmem %s1328_s10, 256  ;;  %p1330_p9 = scmp.lt.s32.totalorder %s383_s15, %s1328_s10 }
  0x84   : > { %p1325_p3 = pnand %p1323_p10, %p1279_p2  ;;  %p1331_p8 = scmp.lt.s32.totalorder %s1329_s23, %s1322_s16 }
  0x86   : > { %p1326_p4 = pneg %p1325_p3  ;;  %p1332_p5 = por %p1331_p8, %p1330_p9 }
  0x88   : > { %p1333_p7 = pnand %p1332_p5, %p1326_p4 }
  0x8a   : > { %1336 = shalt.err (!%p1333_p7)
}
  0x8b   : > { %1140 = dma.hbm_to_vmem [thread:$0]  (!%p1678_p11), %s1687_s22, 128, %s383_s15, %s370_s19  }
  0x8c   : > { %p1966_p13 = scmp.ne.s32.totalorder %s1957_s11, 0 }
  0x8d   : > { %s1738_s2 = sand.u32 (!%p1966_p13), 1, %s1447_s25   ;;  %p1967_p8 = scmp.ne.s32.totalorder (!%p1966_p13), %s1954_s9, 0 }
  0x8e   : > { %391 = sbr.rel (%p1966_p13) target bundleno = 591 (0x24f), region = 44  ;;  %s1040_s18 = sshll.u32 (!%p1966_p13), %s1738_s2, 3 }
  0x8f   : > { %s394_s20 = scalar_lea.sflag (!%p1966_p13), [#allocation5], %s1738_s2  ;;  %s1742_s13 = scalar_lea.vmem (!%p1966_p13), [#allocation4], %s1040_s18 }
  0x95   : > { %1418 = dma.done.wait (%p1967_p8), %s394_s20, 128  }
  0x96   : > { %1420 = vsyncadd (%p1967_p8), %s394_s20, 4294967168  ;;  %s402_s17 = sand.u32 1, %s1559_s30   ;;  %s1749_s22 = scalar_lea.vmem [#allocation7], %s1040_s18 }
  0x97   : > { %s403_s11 = scalar_lea.sflag [#allocation8], %s402_s17 }
  0x98   : > { %1422 = dma.done.wait (%p1967_p8), %s403_s11, 128  }
  0x99   : > { %1424 = vsyncadd (%p1967_p8), %s403_s11, 4294967168  ;;  %p1968_p11 = scmp.eq.s32.totalorder %s1559_s30, 0 }
  0x9b   : > { %1426 = dma.done.wait (%p1968_p11), [#allocation8], 512   ;;  %p1969_p2 = pmov %p1968_p11 }
  0x9d   : > { %1428 = vsyncadd (%p1969_p2), [#allocation8], 4294966784  ;;  %p1970_p12 = pmov %p1969_p2 }
  0x9e   : > { %p1971_p0 = pmov %p1969_p2 }
  0x9f   : > { %1430 = dma.done.wait (%p1970_p12), [#allocation11], 512  }
  0xa0   : > { %1432 = vsyncadd (%p1971_p0), [#allocation11], 4294966784  ;;  %v1471_v0 = vmov 0.0   ;;  %vm1472_vm0 = vmmov 0   ;;  %v481_v1 = vld [vmem:[#allocation9] sm:$0xff]  ;;  %v482_v2 = vld [vmem:[#allocation9 + $0x8] sm:$0xff] }
  0xa1   : > { %1084 = vmatprep.subr.bf16.mxu0 %v1471_v0  ;;  %1092 = vmatprep.subr.bf16.mxu1 %v1471_v0  ;;  %v485_v3 = vld [vmem:[#allocation10] sm:$0xff]  ;;  %v491_v4 = vpack.c.bf16 %v482_v2, %v481_v1  ;;  %v486_v5 = vld [vmem:[#allocation10 + $0x8] sm:$0xff]  ;;  %v483_v6 = vld [vmem:[#allocation9 + $0x10] sm:$0xff]  ;;  %vm503_vm1 = vcmask 261120   ;;  %vm476_vm2 = vcmask 785408   ;;  %s1108_s30 = smul.u32 96, %s1738_s2 }
  0xa2   : > { %1088 = vmatprep.mubr.msk.bf16.mxu0 %vm1472_vm0, %v1471_v0  ;;  %1096 = vmatprep.mubr.msk.bf16.mxu1 %vm1472_vm0, %v1471_v0  ;;  %v484_v7 = vld [vmem:[#allocation9 + $0x18] sm:$0xff]  ;;  %v493_v8 = vpack.c.bf16 %v486_v5, %v485_v3  ;;  %v487_v9 = vld [vmem:[#allocation10 + $0x10] sm:$0xff]  ;;  %v497_v11 = vadd.f32 %v485_v3, %v481_v1  ;;  %v498_v12 = vadd.f32 %v486_v5, %v482_v2  ;;  %v479_v14 = vld [vmem:[%s1742_s13] sm:$0xff]  ;;  %vm664_vm3 = vcmask 64512   ;;  %s1473_s19 = smov 120   ;;  %s1474_s21 = smov 112  }
  0xa3   : > { %v488_v10 = vld [vmem:[#allocation10 + $0x18] sm:$0xff]  ;;  %1085 = vmatpush3.bf16.msra.mxu0 %v491_v4  ;;  %v492_v13 = vpack.c.bf16 %v484_v7, %v483_v6  ;;  %v489_v17 = vpack.c.bf16 %v479_v14, %v479_v14  ;;  %v499_v19 = vadd.f32 %v487_v9, %v483_v6  ;;  %477 = vst.msk [vmem:[#allocation2] sm:$0xff] %vm476_vm2, %v1471_v0  ;;  %478 = vst.msk [vmem:[#allocation3] sm:$0xff] %vm476_vm2, %v1471_v0  ;;  %v1047_v41 = vld [vmem:[%s1940_s4] ss:$0 sm:$0xff]  ;;  %s1780_s3 = scalar_lea.vmem [#allocation12], %s1108_s30 }
  0xa4   : > { %1093 = vmatpush3.bf16.msra.mxu1 %v493_v8  ;;  %1086 = vmatprep.subr.bf16.mxu0 %v1471_v0  ;;  %v494_v15 = vpack.c.bf16 %v488_v10, %v487_v9  ;;  %v480_v16 = vld [vmem:[%s1749_s22] sm:$0xff]  ;;  %v501_v18 = vpack.c.bf16 %v498_v12, %v497_v11  ;;  %v500_v20 = vadd.f32 %v488_v10, %v484_v7  ;;  %s1475_s16 = smov 104   ;;  %s1476_s8 = smov 96  }
  0xa5   : > { %1094 = vmatprep.subr.bf16.mxu1 %v1471_v0  ;;  %v490_v21 = vpack.c.bf16 %v480_v16, %v480_v16  ;;  %v495_v22 = vadd.f32 %v480_v16, %v479_v14  ;;  %v1048_v47 = vld [vmem:[%s1941_s5] ss:$0 sm:$0xff]  ;;  %s1787_s10 = scalar_lea.vmem [#allocation13], %s1108_s30  ;;  %s1477_s23 = smov 88  }
  0xa6   : > { %v502_v23 = vpack.c.bf16 %v500_v20, %v499_v19  ;;  %s1478_s18 = smov 80   ;;  %s1479_s20 = smov 72  }
  0xa7   : > { %1087 = vmatpush3.bf16.msra.mxu0 %v492_v13  ;;  %v496_v24 = vpack.c.bf16 %v495_v22, %v495_v22  ;;  %s1480_s13 = smov 64   ;;  %s1481_s17 = smov 56  }
  0xa8   : > { %1095 = vmatpush3.bf16.msra.mxu1 %v494_v15  ;;  %1100 = vmatprep.subr.bf16.mxu0 %v1471_v0  ;;  %s1482_s11 = smov 48   ;;  %s1483_s22 = smov 40  }
  0xa9   : > { %s1109_s30 = smul.u32 1536, %s1455_s27  ;;  %s802_s9 = sshll.u32 %s1780_s3, 4  ;;  %s1839_s9 = int_to_ptr.vmem [resolvable:$true] %s802_s9 }
  0xaa   : > { %1089 = vmatmul.mubr.msk.bf16.vlgmr.msra.gmra.mrb[0].mxu0 %vm503_vm1, %v489_v17  ;;  %v636_v27 = vld [vmem:[#allocation2] sm:$0xff]  ;;  %v640_v39 = vld [vmem:[#allocation3] sm:$0xff]  ;;  %s822_s12 = sshll.u32 %s1787_s10, 4  ;;  %s780_s28 = scalar_lea.sflag [#allocation6], %s1738_s2  ;;  %s1882_s12 = int_to_ptr.vmem [resolvable:$true] %s822_s12 }
  0xab   : > { %1097 = vmatmul.mubr.msk.bf16.vlgmr.msra.gmra.mrb[0].mxu1 %vm503_vm1, %v490_v21  ;;  %1101 = vmatpush3.bf16.msra.mxu0 %v501_v18  ;;  %p1972_p6 = scmp.ne.s32.totalorder %s1963_s14, 0 }
  0xac   : > { %1102 = vmatprep.subr.bf16.mxu0 %v1471_v0  ;;  %1104 = vmatprep.mubr.msk.bf16.mxu0 %vm1472_vm0, %v1471_v0 }
  0xaf   : > { %1103 = vmatpush3.bf16.msra.mxu0 %v502_v23 }
  0xb2   : > { %1105 = vmatmul.mubr.msk.bf16.vlgmr.msra.gmra.mrb[4].mxu0 %vm503_vm1, %v496_v24 }
 0x17d   : > { %v541_v25 = vpop.f32.mrb[0].mxu0 }
 0x17e   : > { %v584_v26 = vpop.f32.mrb[0].mxu1  ;;  %v1090_v28 = vpop.f32.mrb[1].mxu0 }
 0x17f   : > { %v633_v29 = vsub.f32 %v541_v25, %v584_v26  ;;  %v544_v30 = vpop.f32.mrb[2].mxu0  ;;  %v1098_v31 = vpop.f32.mrb[1].mxu1 }
 0x180   : > { %v1091_v32 = vpop.f32.mrb[3].mxu0  ;;  %v587_v33 = vpop.f32.mrb[2].mxu1 }
 0x181   : > { %v637_v34 = vadd.f32 %v636_v27, %v633_v29  ;;  %v1099_v35 = vpop.f32.mrb[3].mxu1 }
 0x183   : > { %639 = vst.msk [vmem:[#allocation2] sm:$0xff] %vm476_vm2, %v637_v34 }
 0x185   : > { %v627_v36 = vpop.f32.mrb[4].mxu0 }
 0x186   : > { %v634_v37 = vsub.f32 %v627_v36, %v541_v25  ;;  %v1106_v38 = vpop.f32.mrb[5].mxu0 }
 0x187   : > { %v630_v40 = vpop.f32.mrb[6].mxu0 }
 0x188   : > { %v635_v42 = vsub.f32 %v634_v37, %v584_v26  ;;  %v1107_v43 = vpop.f32.mrb[7].mxu0 }
 0x18a   : > { %v646_v44 = vld [vmem:[#allocation2] sm:$0xff]  ;;  %v641_v45 = vadd.f32 %v640_v39, %v635_v42 }
 0x18b   : > { %v654_v46 = vadd.f32 %v1047_v41, %v646_v44 }
 0x18c   : > { %642 = vst.msk [vmem:[#allocation3] sm:$0xff] %vm476_vm2, %v641_v45 }
 0x18d   : > { %668 = vrot.lane.b32.xlu0 %v654_v46, %s1473_s19  ;;  %679 = vrot.lane.b32.xlu1 %v654_v46, %s1474_s21  ;;  %665 = vst.msk [vmem:[%s1780_s3] sm:$0xff] %vm664_vm3, %v654_v46 }
 0x191   : > { %689 = vrot.lane.b32.xlu0 %v654_v46, %s1475_s16 }
 0x193   : > { %v655_v48 = vld [vmem:[#allocation3] sm:$0xff] }
 0x194   : > { %v663_v49 = vadd.f32 %v1048_v47, %v655_v48 }
 0x195   : > { %699 = vrot.lane.b32.xlu0 %v654_v46, %s1476_s8 }
 0x196   : > { %684 = vrot.lane.b32.xlu1 %v663_v49, %s1474_s21  ;;  %666 = vst.msk [vmem:[%s1787_s10] sm:$0xff] %vm664_vm3, %v663_v49  ;;  %s1837_s21 = scalar_lea.hbm %s1942_s6, %s1109_s30 }
 0x199   : > { %709 = vrot.lane.b32.xlu0 %v654_v46, %s1477_s23 }
 0x19a   : > { %694 = vrot.lane.b32.xlu1 %v663_v49, %s1475_s16  ;;  %s1337_s16 = scalar_lea.vmem %s1839_s9, 1536 }
 0x19b   : > { %p1338_p1 = scmp.ne.s32.totalorder %s1839_s9, %s1337_s16 }
 0x19d   : > { %719 = vrot.lane.b32.xlu0 %v654_v46, %s1478_s18  ;;  %p1339_p10 = pnand %p1338_p1, %p1972_p6 }
 0x19e   : > { %704 = vrot.lane.b32.xlu1 %v663_v49, %s1476_s8  ;;  %s1484_s8 = smov [#allocation12]  }
 0x19f   : > { %p1340_p3 = pneg %p1339_p10 }
 0x1a1   : > { %729 = vrot.lane.b32.xlu0 %v654_v46, %s1479_s20 }
 0x1a2   : > { %714 = vrot.lane.b32.xlu1 %v663_v49, %s1477_s23  ;;  %s1341_s23 = sshll.u32 %s1484_s8, 4  ;;  %s1342_s23 = int_to_ptr.vmem [resolvable:$false] %s1341_s23 }
 0x1a3   : > { %p1344_p4 = scmp.lt.s32.totalorder %s1839_s9, %s1342_s23 }
 0x1a5   : > { %739 = vrot.lane.b32.xlu0 %v654_v46, %s1480_s13 }
 0x1a6   : > { %724 = vrot.lane.b32.xlu1 %v663_v49, %s1478_s18  ;;  %s1343_s18 = scalar_lea.vmem %s1342_s23, 3072 }
 0x1a7   : > { %p1345_p9 = scmp.lt.s32.totalorder %s1343_s18, %s1337_s16 }
 0x1a9   : > { %749 = vrot.lane.b32.xlu0 %v654_v46, %s1481_s17  ;;  %p1346_p5 = por %p1345_p9, %p1344_p4 }
 0x1aa   : > { %734 = vrot.lane.b32.xlu1 %v663_v49, %s1479_s20 }
 0x1ab   : > { %p1347_p7 = pnand %p1346_p5, %p1340_p3 }
 0x1ad   : > { %759 = vrot.lane.b32.xlu0 %v654_v46, %s1482_s11 }
 0x1ae   : > { %744 = vrot.lane.b32.xlu1 %v663_v49, %s1480_s13 }
 0x1b1   : > { %674 = vrot.lane.b32.xlu0 %v663_v49, %s1473_s19 }
 0x1b2   : > { %754 = vrot.lane.b32.xlu1 %v663_v49, %s1481_s17 }
 0x1b5   : > { %769 = vrot.lane.b32.xlu0 %v654_v46, %s1483_s22 }
 0x1b6   : > { %764 = vrot.lane.b32.xlu1 %v663_v49, %s1482_s11 }
 0x1ba   : > { %774 = vrot.lane.b32.xlu1 %v663_v49, %s1483_s22 }
 0x1ff   : > { %v669_v50 = vpop.permute.xlu0 %668  ;;  %v680_v51 = vpop.permute.xlu1 %679 }
 0x200   : > { %1049 = vst.msk [vmem:[%s1780_s3 + $0x8] sm:$0xff] %vm664_vm3, %v669_v50  ;;  %1051 = vst.msk [vmem:[%s1780_s3 + $0x10] sm:$0xff] %vm664_vm3, %v680_v51 }
 0x203   : > { %v690_v52 = vpop.permute.xlu0 %689 }
 0x204   : > { %1053 = vst.msk [vmem:[%s1780_s3 + $0x18] sm:$0xff] %vm664_vm3, %v690_v52 }
 0x207   : > { %v700_v53 = vpop.permute.xlu0 %699 }
 0x208   : > { %1055 = vst.msk [vmem:[%s1780_s3 + $0x20] sm:$0xff] %vm664_vm3, %v700_v53  ;;  %v685_v54 = vpop.permute.xlu1 %684 }
 0x209   : > { %1052 = vst.msk [vmem:[%s1787_s10 + $0x10] sm:$0xff] %vm664_vm3, %v685_v54 }
 0x20b   : > { %v710_v55 = vpop.permute.xlu0 %709 }
 0x20c   : > { %1057 = vst.msk [vmem:[%s1780_s3 + $0x28] sm:$0xff] %vm664_vm3, %v710_v55  ;;  %v695_v56 = vpop.permute.xlu1 %694 }
 0x20d   : > { %1054 = vst.msk [vmem:[%s1787_s10 + $0x18] sm:$0xff] %vm664_vm3, %v695_v56 }
 0x20f   : > { %v720_v57 = vpop.permute.xlu0 %719 }
 0x210   : > { %1059 = vst.msk [vmem:[%s1780_s3 + $0x30] sm:$0xff] %vm664_vm3, %v720_v57  ;;  %v705_v58 = vpop.permute.xlu1 %704 }
 0x211   : > { %1056 = vst.msk [vmem:[%s1787_s10 + $0x20] sm:$0xff] %vm664_vm3, %v705_v58 }
 0x213   : > { %v730_v59 = vpop.permute.xlu0 %729 }
 0x214   : > { %1061 = vst.msk [vmem:[%s1780_s3 + $0x38] sm:$0xff] %vm664_vm3, %v730_v59  ;;  %v715_v60 = vpop.permute.xlu1 %714 }
 0x215   : > { %1058 = vst.msk [vmem:[%s1787_s10 + $0x28] sm:$0xff] %vm664_vm3, %v715_v60 }
 0x217   : > { %v740_v61 = vpop.permute.xlu0 %739 }
 0x218   : > { %1063 = vst.msk [vmem:[%s1780_s3 + $0x40] sm:$0xff] %vm664_vm3, %v740_v61  ;;  %v725_v62 = vpop.permute.xlu1 %724 }
 0x219   : > { %1060 = vst.msk [vmem:[%s1787_s10 + $0x30] sm:$0xff] %vm664_vm3, %v725_v62 }
 0x21b   : > { %v750_v63 = vpop.permute.xlu0 %749 }
 0x21c   : > { %1065 = vst.msk [vmem:[%s1780_s3 + $0x48] sm:$0xff] %vm664_vm3, %v750_v63  ;;  %v735_v0 = vpop.permute.xlu1 %734 }
 0x21d   : > { %1062 = vst.msk [vmem:[%s1787_s10 + $0x38] sm:$0xff] %vm664_vm3, %v735_v0 }
 0x21f   : > { %v760_v1 = vpop.permute.xlu0 %759 }
 0x220   : > { %1067 = vst.msk [vmem:[%s1780_s3 + $0x50] sm:$0xff] %vm664_vm3, %v760_v1  ;;  %v745_v2 = vpop.permute.xlu1 %744 }
 0x221   : > { %1064 = vst.msk [vmem:[%s1787_s10 + $0x40] sm:$0xff] %vm664_vm3, %v745_v2 }
 0x223   : > { %v675_v3 = vpop.permute.xlu0 %674 }
 0x224   : > { %1050 = vst.msk [vmem:[%s1787_s10 + $0x8] sm:$0xff] %vm664_vm3, %v675_v3  ;;  %v755_v4 = vpop.permute.xlu1 %754 }
 0x225   : > { %1066 = vst.msk [vmem:[%s1787_s10 + $0x48] sm:$0xff] %vm664_vm3, %v755_v4 }
 0x227   : > { %v770_v5 = vpop.permute.xlu0 %769 }
 0x228   : > { %1069 = vst.msk [vmem:[%s1780_s3 + $0x58] sm:$0xff] %vm664_vm3, %v770_v5  ;;  %v765_v6 = vpop.permute.xlu1 %764 }
 0x229   : > { %1068 = vst.msk [vmem:[%s1787_s10 + $0x50] sm:$0xff] %vm664_vm3, %v765_v6 }
 0x22a   : > { %1350 = shalt.err (!%p1347_p7)
}
 0x22b   : > { %s1351_s3 = scalar_lea.hbm %s1837_s21, 1536  ;;  %s1355_s17 = scalar_lea.hbm %s1942_s6, 3072 }
 0x22c   : > { %p1352_p13 = scmp.ne.s32.totalorder %s1837_s21, %s1351_s3  ;;  %p1356_p2 = scmp.lt.u32.totalorder %s1837_s21, %s1942_s6 }
 0x22d   : > { %p1357_p12 = scmp.lt.u32.totalorder %s1355_s17, %s1351_s3  ;;  %p1359_p1 = scmp.lt.u32.totalorder %s1351_s3, %s1837_s21 }
 0x22e   : > { %p1353_p8 = pnand %p1352_p13, %p1972_p6 }
 0x22f   : > { %p1358_p0 = por %p1357_p12, %p1356_p2 }
 0x230   : > { %p1354_p11 = pneg %p1353_p8 }
 0x231   : > { %p1360_p10 = por %p1359_p1, %p1358_p0 }
 0x233   : > { %p1361_p3 = pnand %p1360_p10, %p1354_p11 }
 0x235   : > { %1364 = shalt.err (!%p1361_p3)
}
 0x236   : > { %s1485_s15 = smov 128   ;;  %s1486_s19 = smov 8   ;;  %v775_v7 = vpop.permute.xlu1 %774 }
 0x237   : > { %1123 = dma.vmem_to_hbm [thread:$0]  (%p1972_p6), %s1839_s9, 1536, %s1837_s21, %s780_s28, %s1485_s15, %s1485_s15, %s1486_s19  }
 0x238   : > { %s1878_s23 = scalar_lea.hbm %s1943_s7, %s1109_s30  ;;  %1070 = vst.msk [vmem:[%s1787_s10 + $0x58] sm:$0xff] %vm664_vm3, %v775_v7  ;;  %s785_s18 = scalar_lea.sflag [#allocation14], %s1738_s2 }
 0x239   : > { %s1365_s3 = scalar_lea.vmem %s1882_s12, 1536  ;;  %s1487_s27 = smov [#allocation13]  }
 0x23a   : > { %p1366_p4 = scmp.ne.s32.totalorder %s1882_s12, %s1365_s3  ;;  %s1369_s9 = sshll.u32 %s1487_s27, 4  ;;  %s1370_s9 = int_to_ptr.vmem [resolvable:$false] %s1369_s9 }
 0x23b   : > { %s1371_s30 = scalar_lea.vmem %s1370_s9, 3072  ;;  %p1372_p7 = scmp.lt.s32.totalorder %s1882_s12, %s1370_s9 }
 0x23c   : > { %p1367_p9 = pnand %p1366_p4, %p1972_p6  ;;  %p1373_p13 = scmp.lt.s32.totalorder %s1371_s30, %s1365_s3 }
 0x23e   : > { %p1368_p5 = pneg %p1367_p9  ;;  %p1374_p8 = por %p1373_p13, %p1372_p7 }
 0x240   : > { %p1375_p11 = pnand %p1374_p8, %p1368_p5 }
 0x242   : > { %1378 = shalt.err (!%p1375_p11)
}
 0x243   : > { %s1379_s10 = scalar_lea.hbm %s1878_s23, 1536  ;;  %s1383_s20 = scalar_lea.hbm %s1943_s7, 3072 }
 0x244   : > { %p1380_p2 = scmp.ne.s32.totalorder %s1878_s23, %s1379_s10  ;;  %p1384_p1 = scmp.lt.u32.totalorder %s1878_s23, %s1943_s7 }
 0x245   : > { %p1385_p10 = scmp.lt.u32.totalorder %s1383_s20, %s1379_s10  ;;  %p1387_p4 = scmp.lt.u32.totalorder %s1379_s10, %s1878_s23 }
 0x246   : > { %p1381_p12 = pnand %p1380_p2, %p1972_p6 }
 0x247   : > { %p1386_p3 = por %p1385_p10, %p1384_p1 }
 0x248   : > { %p1382_p0 = pneg %p1381_p12 }
 0x249   : > { %p1388_p9 = por %p1387_p4, %p1386_p3 }
 0x24b   : > { %p1389_p5 = pnand %p1388_p9, %p1382_p0 }
 0x24d   : > { %1392 = shalt.err (!%p1389_p5)
}
 0x24e   : > { %1124 = dma.vmem_to_hbm [thread:$0]  (%p1972_p6), %s1882_s12, 1536, %s1878_s23, %s785_s18, %s1485_s15, %s1485_s15, %s1486_s19  }
 0x24f PF: > { %s1973_s11 = sld [smem:[#allocation22_spill]]  ;;  %s837_s22 = sand.u32 1, %s1443_s24  }
 0x250   : > { %p1975_p13 = scmp.ge.s32.totalorder %s1463_s29, 2  ;;  %s838_s16 = scalar_lea.sflag [#allocation6], %s837_s22 }
 0x255   : > { %p1974_p7 = scmp.ne.s32.totalorder %s1973_s11, 0 }
 0x257   : > { %p1142_p8 = pnand %p1975_p13, %p1974_p7 }
 0x259   : > { %1434 = dma.done.wait (!%p1142_p8), %s838_s16, 1536  }
 0x25a   : > { %1436 = vsyncadd (!%p1142_p8), %s838_s16, 4294965760  ;;  %s847_s14 = scalar_lea.sflag [#allocation14], %s837_s22 }
 0x25b   : > { %1438 = dma.done.wait (!%p1142_p8), %s847_s14, 1536  }
 0x25c   : > { %1440 = vsyncadd (!%p1142_p8), %s847_s14, 4294965760  ;;  %s31_s29 = sadd.s32 1, %s1463_s29   ;;  %s1976_s2 = sld [smem:[#allocation24_spill]] }
 0x25d   : > { %p28_p11 = scmp.ge.s32.totalorder %s31_s29, 4   ;;  %s1977_s27 = sld [smem:[#allocation21_spill]] }
 0x25e   : > { %s1978_s28 = sld [smem:[#allocation23_spill]]  ;;  %s1979_s24 = smov %s1447_s25 }
 0x25f   : > { %s1980_s25 = smov %s1451_s26  ;;  %30 = sbr.rel (!%p28_p11) target bundleno = 14 (0xe), region = 165 }
 0x262   : > { %s1981_s26 = smov %s1976_s2 }
 0x266   :  { %852 = vsyncpa [#allocation5], 1 }
 0x267   :  { %854 = vsyncpa [#allocation5 + $0x1], 1 }
 0x268   :  { %855 = vsyncpa [#allocation8], 1 }
 0x269   :  { %857 = vsyncpa [#allocation8 + $0x1], 1 }
 0x26a   :  { %858 = vsyncpa [#allocation11], 1 }
 0x26b   :  { %859 = vsyncpa [#allocation6], 1 }
 0x26c   :  { %861 = vsyncpa [#allocation6 + $0x1], 1 }
 0x26d   :  { %862 = vsyncpa [#allocation14], 1 }
 0x26e   :  { %864 = vsyncpa [#allocation14 + $0x1], 1 }

</bundles_post_ra>
